<compile_context>
chip_gen: v7x
topology: tpu7x:2x2x1
jax: 0.10.0
libtpu: 0.0.40
codegen_flags: <defaults>
</compile_context>

<pallas_src>
import jax
import jax.numpy as jnp
from jax import lax
from jax.experimental import pallas as pl
from jax.experimental.pallas import tpu as pltpu
import numpy as np


# ------------------------------ helpers -------------------------------------

def _round_up(n, m):
    return ((n + m - 1) // m) * m


def _pad2(a, rows, cols):
    out = jnp.zeros((rows, cols), a.dtype)
    return out.at[:a.shape[0], :a.shape[1]].set(a)


def _vmem_limit_bytes():
    # Per-generation VMEM sizing (v5e/v6e: 128 MiB physical, v7x: 64 MiB per TC),
    # with headroom for compiler-internal scratch.
    cap = 128 * 1024 * 1024
    try:
        info = pltpu.get_tpu_info()
        cap = int(getattr(info, "vmem_capacity_bytes", cap))
    except Exception:
        pass
    return int(min(cap * 3 // 4, 100 * 1024 * 1024))


def _compiler_params():
    return pltpu.CompilerParams(
        # batch blocks are independent (megacore-shardable on v7x);
        # time chunks carry h/c -> sequential.
        dimension_semantics=("parallel", "arbitrary"),
        vmem_limit_bytes=_vmem_limit_bytes(),
    )


def _const_spec(shape, index_map):
    # Constant-index blocks (weights / biases): single-buffer them so the resident
    # weights don't get a useless second VMEM copy from double-buffering.
    try:
        return pl.BlockSpec(shape, index_map, pipeline_mode=pl.Buffered(1))
    except (TypeError, AttributeError):
        return pl.BlockSpec(shape, index_map)


def _fit_time_chunk(tt, Bb, Hp, H4, Dp, Op, budget):
    # Shrink the time chunk until the chunk-resident VMEM (dominant: f32 gx_scr,
    # bf16 hidden buffer, double-buffered x/out chunks) fits half the budget.
    while tt > 1:
        chunk_bytes = tt * Bb * (
            H4 * 4                       # gx_scr (f32)
            + Hp * 2                     # hbuf (bf16, fused-FC layer)
            + 2 * max(Dp, Hp) * 2        # double-buffered x chunk (bf16)
            + 2 * max(Hp * 2, Op * 4))   # double-buffered out chunk
        if chunk_bytes <= budget // 2:
            break
        tt = max(1, tt // 2)
    return tt


# ----------------------------- Pallas kernels --------------------------------

def _lstm_recurrence(x_ref, wih_ref, whh_ref, b_ref, h_scr, c_scr, gx_scr, write_h):
    """Shared LSTM chunk recurrence.

    x_ref:   (Tt, Bb, Din)  bf16 input chunk (time-major)
    wih_ref: (Din, 4Hp)     bf16 input weights, gate order (i, f, o, g)
    whh_ref: (Hp, 4Hp)      bf16 recurrent weights, gate order (i, f, o, g)
    b_ref:   (1, 4Hp)       f32 b_ih + b_hh
    h_scr, c_scr: (Bb, Hp)  f32 carry, persists across grid steps
    gx_scr:  (Tt, Bb, 4Hp)  f32 hoisted input projection for the whole chunk
    """
    Tt, Bb, Din = x_ref.shape
    Hp = h_scr.shape[1]
    H4 = 4 * Hp

    @pl.when(pl.program_id(1) == 0)      # new sequence (time chunk 0) -> reset carry
    def _():
        h_scr[...] = jnp.zeros_like(h_scr)
        c_scr[...] = jnp.zeros_like(c_scr)

    # Hoisted input projection + bias for the whole chunk: one big bf16 MXU matmul
    # (f32 accumulate) instead of Tt tiny per-step matmuls.
    x2 = x_ref[...].reshape(Tt * Bb, Din)
    gx = jnp.dot(x2, wih_ref[...], preferred_element_type=jnp.float32) + b_ref[...]
    gx_scr[...] = gx.reshape(Tt, Bb, H4)

    def step(t, carry):
        gates = gx_scr[t] + jnp.dot(
            h_scr[...].astype(whh_ref.dtype), whh_ref[...],
            preferred_element_type=jnp.float32)
        # gate layout (i, f, o, g): one sigmoid over a contiguous (Bb, 3Hp) slab,
        # one tanh over the trailing (Bb, Hp) slab.
        sig = jax.nn.sigmoid(gates[:, :3 * Hp])
        i_g = sig[:, 0 * Hp:1 * Hp]
        f_g = sig[:, 1 * Hp:2 * Hp]
        o_g = sig[:, 2 * Hp:3 * Hp]
        g_g = jnp.tanh(gates[:, 3 * Hp:])
        c = f_g * c_scr[...] + i_g * g_g
        h = o_g * jnp.tanh(c)
        c_scr[...] = c
        h_scr[...] = h
        write_h(t, h)
        return carry

    # Partial unroll: keeps MXU-push / EUP-gate overlap visible to the LLO
    # scheduler without exploding bundle count / vreg live ranges for large Tt.
    lax.fori_loop(0, Tt, step, 0, unroll=min(8, Tt))


def _lstm_layer_kernel(x_ref, wih_ref, whh_ref, b_ref, out_ref,
                       h_scr, c_scr, gx_scr):
    def write_h(t, h):
        out_ref[t] = h.astype(out_ref.dtype)     # bf16 inter-layer activations

    _lstm_recurrence(x_ref, wih_ref, whh_ref, b_ref, h_scr, c_scr, gx_scr, write_h)


def _lstm_layer_fc_kernel(x_ref, wih_ref, whh_ref, b_ref, wfc_ref, bfc_ref,
                          out_ref, h_scr, c_scr, gx_scr, hbuf_scr):
    # Last layer: keep per-step h in VMEM scratch and apply the FC to the whole
    # chunk in one lane-dense matmul (no HBM round-trip of the hidden states).
    def write_h(t, h):
        hbuf_scr[t] = h.astype(hbuf_scr.dtype)

    _lstm_recurrence(x_ref, wih_ref, whh_ref, b_ref, h_scr, c_scr, gx_scr, write_h)

    Tt, Bb, Hp = hbuf_scr.shape
    Op = out_ref.shape[-1]
    hb = hbuf_scr[...].reshape(Tt * Bb, Hp)
    y = jnp.dot(hb, wfc_ref[...], preferred_element_type=jnp.float32) + bfc_ref[...]
    out_ref[...] = y.reshape(Tt, Bb, Op).astype(out_ref.dtype)


# ------------------------------ wrappers --------------------------------------

def _run_lstm_layer(x3d, layer, *, Bb, Tt):
    Tp, Bp, Din = x3d.shape
    w_ih_t, w_hh_t, bias = layer["w_ih_t"], layer["w_hh_t"], layer["bias"]
    Hp = w_hh_t.shape[0]
    H4 = w_ih_t.shape[1]
    grid = (Bp // Bb, Tp // Tt)
    return pl.pallas_call(
        _lstm_layer_kernel,
        out_shape=jax.ShapeDtypeStruct((Tp, Bp, Hp), jnp.bfloat16),
        grid_spec=pltpu.PrefetchScalarGridSpec(
            num_scalar_prefetch=0,
            grid=grid,
            in_specs=[
                pl.BlockSpec((Tt, Bb, Din), lambda b, t: (t, b, 0)),  # streamed x
                _const_spec((Din, H4), lambda b, t: (0, 0)),          # resident weights
                _const_spec((Hp, H4), lambda b, t: (0, 0)),
                _const_spec((1, H4), lambda b, t: (0, 0)),
            ],
            out_specs=pl.BlockSpec((Tt, Bb, Hp), lambda b, t: (t, b, 0)),
            scratch_shapes=[
                pltpu.VMEM((Bb, Hp), jnp.float32),       # h carry
                pltpu.VMEM((Bb, Hp), jnp.float32),       # c carry
                pltpu.VMEM((Tt, Bb, H4), jnp.float32),   # hoisted gate projection
            ],
        ),
        compiler_params=_compiler_params(),
    )(x3d, w_ih_t, w_hh_t, bias)


def _run_lstm_layer_fc(x3d, layer, fc, *, Bb, Tt):
    Tp, Bp, Din = x3d.shape
    w_ih_t, w_hh_t, bias = layer["w_ih_t"], layer["w_hh_t"], layer["bias"]
    w_fc_t, b_fc = fc["w_t"], fc["b"]
    Hp = w_hh_t.shape[0]
    H4 = w_ih_t.shape[1]
    Op = w_fc_t.shape[1]
    grid = (Bp // Bb, Tp // Tt)
    return pl.pallas_call(
        _lstm_layer_fc_kernel,
        out_shape=jax.ShapeDtypeStruct((Tp, Bp, Op), jnp.float32),
        grid_spec=pltpu.PrefetchScalarGridSpec(
            num_scalar_prefetch=0,
            grid=grid,
            in_specs=[
                pl.BlockSpec((Tt, Bb, Din), lambda b, t: (t, b, 0)),
                _const_spec((Din, H4), lambda b, t: (0, 0)),
                _const_spec((Hp, H4), lambda b, t: (0, 0)),
                _const_spec((1, H4), lambda b, t: (0, 0)),
                _const_spec((Hp, Op), lambda b, t: (0, 0)),
                _const_spec((1, Op), lambda b, t: (0, 0)),
            ],
            out_specs=pl.BlockSpec((Tt, Bb, Op), lambda b, t: (t, b, 0)),
            scratch_shapes=[
                pltpu.VMEM((Bb, Hp), jnp.float32),        # h carry
                pltpu.VMEM((Bb, Hp), jnp.float32),        # c carry
                pltpu.VMEM((Tt, Bb, H4), jnp.float32),    # hoisted gate projection
                pltpu.VMEM((Tt, Bb, Hp), jnp.bfloat16),   # chunk hidden buffer for FC
            ],
        ),
        compiler_params=_compiler_params(),
    )(x3d, w_ih_t, w_hh_t, bias, w_fc_t, b_fc)


def lstm_model_forward(x, kparams, *, time_chunk=64, batch_block=None):
    """x: (B, T, input_dim) float -> (B, T, output_dim)."""
    dims = kparams["dims"]
    B, T, Din = x.shape
    Dp, Hp, Op = dims["Dp"], dims["Hp"], dims["Op"]
    H4 = 4 * Hp
    O = dims["output_dim"]

    Bp = _round_up(B, 8)
    if batch_block is None:
        # Split the batch only when there is enough of it to feed both v7x
        # TensorCores; otherwise one block (no redundant W_hh streaming per chip).
        Bb = _round_up(pl.cdiv(Bp, 2), 8) if Bp >= 16 else Bp
    else:
        Bb = min(_round_up(batch_block, 8), Bp)
    Bp = _round_up(Bp, Bb)

    Tt = max(1, min(time_chunk, T))
    Tt = _fit_time_chunk(Tt, Bb, Hp, H4, Dp, Op, _vmem_limit_bytes())
    Tp = _round_up(T, Tt)

    # Zero-pad batch/time/features to (sublane, lane)-friendly sizes. Padding is
    # inert: zero weight rows/cols keep real lanes untouched, padded hidden lanes
    # stay 0, and padded rows / timesteps are sliced off below.
    xp = jnp.zeros((Bp, Tp, Dp), jnp.float32)
    xp = xp.at[:B, :T, :Din].set(x.astype(jnp.float32))
    # Time-major (Tp, Bp, Dp), bf16 streamed chunks.
    h3d = jnp.transpose(xp, (1, 0, 2)).astype(jnp.bfloat16)

    n_layers = len(kparams["lstm"])
    for li, layer in enumerate(kparams["lstm"]):
        if li == n_layers - 1:
            h3d = _run_lstm_layer_fc(h3d, layer, kparams["fc"], Bb=Bb, Tt=Tt)
        else:
            h3d = _run_lstm_layer(h3d, layer, Bb=Bb, Tt=Tt)

    y = jnp.transpose(h3d, (1, 0, 2))     # (Bp, Tp, Op) f32
    return y[:B, :T, :O]


# --------------------------- parameter handling -------------------------------

def init_params(key, input_dim, hidden_dim, layer_dim, output_dim):
    """Raw PyTorch-layout parameters (gate order i, f, g, o)."""
    stdv = 1.0 / (hidden_dim ** 0.5)
    layers = []
    for l in range(layer_dim):
        in_d = input_dim if l == 0 else hidden_dim
        key, k1, k2, k3, k4 = jax.random.split(key, 5)
        layers.append(dict(
            w_ih=jax.random.uniform(k1, (4 * hidden_dim, in_d), jnp.float32, -stdv, stdv),
            w_hh=jax.random.uniform(k2, (4 * hidden_dim, hidden_dim), jnp.float32, -stdv, stdv),
            b_ih=jax.random.uniform(k3, (4 * hidden_dim,), jnp.float32, -stdv, stdv),
            b_hh=jax.random.uniform(k4, (4 * hidden_dim,), jnp.float32, -stdv, stdv)))
    key, k5, k6 = jax.random.split(key, 3)
    fc = dict(w=jax.random.uniform(k5, (output_dim, hidden_dim), jnp.float32, -stdv, stdv),
              b=jax.random.uniform(k6, (output_dim,), jnp.float32, -stdv, stdv))
    return dict(lstm=layers, fc=fc)


def prepare_params(raw, input_dim, hidden_dim, output_dim):
    """Reorder gates (i,f,g,o)->(i,f,o,g), transpose, fold biases, zero-pad every
    feature axis to lane multiples of 128, and cast weights to bf16 (biases stay
    f32; they are added after the f32-accumulated matmul)."""
    H = hidden_dim
    Hp = _round_up(H, 128)
    Dp = _round_up(input_dim, 128)
    Op = _round_up(output_dim, 128)
    order = (0, 1, 3, 2)   # PyTorch (i, f, g, o) -> kernel (i, f, o, g)

    layers = []
    for li, lp in enumerate(raw["lstm"]):
        in_dp = Dp if li == 0 else Hp
        w_ih, w_hh = lp["w_ih"], lp["w_hh"]
        b = lp["b_ih"] + lp["b_hh"]
        gih = [w_ih[k * H:(k + 1) * H, :].T for k in order]   # each (in_d, H)
        ghh = [w_hh[k * H:(k + 1) * H, :].T for k in order]   # each (H, H)
        gb = [b[k * H:(k + 1) * H] for k in order]            # each (H,)
        layers.append(dict(
            w_ih_t=jnp.concatenate([_pad2(g, in_dp, Hp) for g in gih],
                                   axis=1).astype(jnp.bfloat16),
            w_hh_t=jnp.concatenate([_pad2(g, Hp, Hp) for g in ghh],
                                   axis=1).astype(jnp.bfloat16),
            bias=jnp.concatenate([_pad2(g[None, :], 1, Hp) for g in gb], axis=1)))

    fc = dict(w_t=_pad2(raw["fc"]["w"].T, Hp, Op).astype(jnp.bfloat16),
              b=_pad2(raw["fc"]["b"][None, :], 1, Op))
    return dict(lstm=layers, fc=fc,
                dims=dict(input_dim=input_dim, hidden_dim=hidden_dim,
                          output_dim=output_dim, Dp=Dp, Hp=Hp, Op=Op))


# ------------------------ pure-JAX reference check -----------------------------

def lstm_model_ref(x, raw):
    B, T, _ = x.shape
    seq = x
    for lp in raw["lstm"]:
        w_ih, w_hh = lp["w_ih"], lp["w_hh"]
        b = lp["b_ih"] + lp["b_hh"]
        H = w_hh.shape[1]

        def step(carry, x_t):
            h, c = carry
            gates = x_t @ w_ih.T + h @ w_hh.T + b
            i, f, g, o = jnp.split(gates, 4, axis=-1)
            c = jax.nn.sigmoid(f) * c + jax.nn.sigmoid(i) * jnp.tanh(g)
            h = jax.nn.sigmoid(o) * jnp.tanh(c)
            return (h, c), h

        h0 = jnp.zeros((B, H), jnp.float32)
        c0 = jnp.zeros((B, H), jnp.float32)
        _, ys = lax.scan(step, (h0, c0), jnp.transpose(seq, (1, 0, 2)))
        seq = jnp.transpose(ys, (1, 0, 2))
    return seq @ raw["fc"]["w"].T + raw["fc"]["b"]


# --------------------------------- main ----------------------------------------

if __name__ == "__main__":
    B, T = 2, 8
    input_dim, hidden_dim, layer_dim, output_dim = 16, 32, 2, 10

    key = jax.random.PRNGKey(0)
    key, xk = jax.random.split(key)
    x = jax.random.normal(xk, (B, T, input_dim), jnp.float32)
    raw = init_params(key, input_dim, hidden_dim, layer_dim, output_dim)
    kparams = prepare_params(raw, input_dim, hidden_dim, output_dim)

    ref = jax.block_until_ready(lstm_model_ref(x, raw))

    # time_chunk=4 -> 2 grid steps along time, exercising the carry-across-chunks
    # path; the default (large chunk, clamped to T) exercises the single-chunk path.
    out_multi = jax.block_until_ready(lstm_model_forward(x, kparams, time_chunk=4))
    out_default = jax.block_until_ready(lstm_model_forward(x, kparams))

    assert out_multi.shape == (B, T, output_dim)
    assert out_default.shape == (B, T, output_dim)
    # bf16 weights/activations (f32 accumulation) -> loosened tolerance vs f32 ref.
    np.testing.assert_allclose(np.asarray(out_multi), np.asarray(ref),
                               rtol=5e-2, atol=5e-2)
    np.testing.assert_allclose(np.asarray(out_default), np.asarray(ref),
                               rtol=5e-2, atol=5e-2)
    print("KERNEL_OK")
</pallas_src>

<mosaic_0001>
module attributes {stable_mosaic.version = 11 : i64} {
  func.func @_lstm_layer_kernel(%arg0: i32, %arg1: i32, %arg2: memref<4x8x128xbf16, #tpu.memory_space<vmem>>, %arg3: memref<128x512xbf16, #tpu.memory_space<vmem>>, %arg4: memref<128x512xbf16, #tpu.memory_space<vmem>>, %arg5: memref<1x512xf32, #tpu.memory_space<vmem>>, %arg6: memref<4x8x128xbf16, #tpu.memory_space<vmem>>, %arg7: memref<8x128xf32, #tpu.memory_space<vmem>>, %arg8: memref<8x128xf32, #tpu.memory_space<vmem>>, %arg9: memref<4x8x512xf32, #tpu.memory_space<vmem>>) attributes {dimension_semantics = [#tpu.dimension_semantics<parallel>, #tpu.dimension_semantics<arbitrary>], iteration_bounds = array<i64: 1, 2>, scalar_prefetch = 0 : i64, scratch_operands = 3 : i64, tpu.core_type = #tpu.core_type<tc>, window_params = [{transform_indices = @transform_0, window_bounds = array<i64: 4, 8, 128>}, {pipeline_mode = #tpu.pipeline_mode<synchronous>, transform_indices = @transform_1, window_bounds = array<i64: 128, 512>}, {pipeline_mode = #tpu.pipeline_mode<synchronous>, transform_indices = @transform_2, window_bounds = array<i64: 128, 512>}, {pipeline_mode = #tpu.pipeline_mode<synchronous>, transform_indices = @transform_3, window_bounds = array<i64: 1, 512>}, {transform_indices = @transform_4, window_bounds = array<i64: 4, 8, 128>}]} {
    %c0_i32 = arith.constant 0 : i32
    %0 = arith.cmpi eq, %arg1, %c0_i32 : i32
    %1 = arith.extui %0 : i1 to i32
    %c0_i32_0 = arith.constant 0 : i32
    %2 = arith.cmpi ne, %1, %c0_i32_0 : i32
    scf.if %2 {
      %cst_75 = arith.constant 0.000000e+00 : f32
      %140 = vector.broadcast %cst_75 : f32 to vector<8x128xf32>
      %c0_76 = arith.constant 0 : index
      %c0_77 = arith.constant 0 : index
      %141 = vector.load %arg7[%c0_76, %c0_77] : memref<8x128xf32, #tpu.memory_space<vmem>>, vector<8x128xf32>
      tpu.vector_store %arg7[%c0_76, %c0_77], %140 {strides = array<i32>} : memref<8x128xf32, #tpu.memory_space<vmem>>, vector<8x128xf32>,
      %cst_78 = arith.constant 0.000000e+00 : f32
      %142 = vector.broadcast %cst_78 : f32 to vector<8x128xf32>
      %c0_79 = arith.constant 0 : index
      %c0_80 = arith.constant 0 : index
      %143 = vector.load %arg8[%c0_79, %c0_80] : memref<8x128xf32, #tpu.memory_space<vmem>>, vector<8x128xf32>
      tpu.vector_store %arg8[%c0_79, %c0_80], %142 {strides = array<i32>} : memref<8x128xf32, #tpu.memory_space<vmem>>, vector<8x128xf32>,
    } else {
    }
    %c0 = arith.constant 0 : index
    %c0_1 = arith.constant 0 : index
    %c0_2 = arith.constant 0 : index
    %3 = vector.load %arg2[%c0, %c0_1, %c0_2] : memref<4x8x128xbf16, #tpu.memory_space<vmem>>, vector<4x8x128xbf16>
    %4 = vector.shape_cast %3 : vector<4x8x128xbf16> to vector<32x128xbf16>
    %c0_3 = arith.constant 0 : index
    %c0_4 = arith.constant 0 : index
    %5 = vector.load %arg3[%c0_3, %c0_4] : memref<128x512xbf16, #tpu.memory_space<vmem>>, vector<128x512xbf16>
    %cst = arith.constant dense<0.000000e+00> : vector<32x512xf32>
    %6 = tpu.matmul %4, %5, %cst {dimension_numbers = #tpu.dot_dimension_numbers<[1], [0], [0], [1], [0, 0, 1, 1], [], []>} : vector<32x128xbf16>, vector<128x512xbf16>, vector<32x512xf32> -> vector<32x512xf32>
    %c0_5 = arith.constant 0 : index
    %c0_6 = arith.constant 0 : index
    %7 = vector.load %arg5[%c0_5, %c0_6] : memref<1x512xf32, #tpu.memory_space<vmem>>, vector<1x512xf32>
    %8 = vector.broadcast %7 : vector<1x512xf32> to vector<32x512xf32>
    %9 = arith.addf %6, %8 : vector<32x512xf32>
    %10 = vector.shape_cast %9 : vector<32x512xf32> to vector<4x8x512xf32>
    %c0_7 = arith.constant 0 : index
    %c0_8 = arith.constant 0 : index
    %c0_9 = arith.constant 0 : index
    %11 = vector.load %arg9[%c0_7, %c0_8, %c0_9] : memref<4x8x512xf32, #tpu.memory_space<vmem>>, vector<4x8x512xf32>
    tpu.vector_store %arg9[%c0_7, %c0_8, %c0_9], %10 {strides = array<i32>} : memref<4x8x512xf32, #tpu.memory_space<vmem>>, vector<4x8x512xf32>,
    %c0_i32_10 = arith.constant 0 : i32
    %12 = arith.index_cast %c0_i32_10 : i32 to index
    %c0_11 = arith.constant 0 : index
    %c0_12 = arith.constant 0 : index
    %13 = vector.load %arg9[%12, %c0_11, %c0_12] : memref<4x8x512xf32, #tpu.memory_space<vmem>>, vector<1x8x512xf32>
    %14 = vector.shape_cast %13 : vector<1x8x512xf32> to vector<8x512xf32>
    %c0_13 = arith.constant 0 : index
    %c0_14 = arith.constant 0 : index
    %15 = vector.load %arg7[%c0_13, %c0_14] : memref<8x128xf32, #tpu.memory_space<vmem>>, vector<8x128xf32>
    %16 = arith.truncf %15 : vector<8x128xf32> to vector<8x128xbf16>
    %c0_15 = arith.constant 0 : index
    %c0_16 = arith.constant 0 : index
    %17 = vector.load %arg4[%c0_15, %c0_16] : memref<128x512xbf16, #tpu.memory_space<vmem>>, vector<128x512xbf16>
    %cst_17 = arith.constant dense<0.000000e+00> : vector<8x512xf32>
    %18 = tpu.matmul %16, %17, %cst_17 {dimension_numbers = #tpu.dot_dimension_numbers<[1], [0], [0], [1], [0, 0, 1, 1], [], []>} : vector<8x128xbf16>, vector<128x512xbf16>, vector<8x512xf32> -> vector<8x512xf32>
    %19 = arith.addf %14, %18 : vector<8x512xf32>
    %20 = vector.extract_strided_slice %19 {offsets = [0, 0], sizes = [8, 384], strides = [1, 1]} : vector<8x512xf32> to vector<8x384xf32>
    %21 = arith.negf %20 : vector<8x384xf32>
    %22 = math.exp %21 : vector<8x384xf32>
    %cst_18 = arith.constant 1.000000e+00 : f32
    %23 = vector.broadcast %cst_18 : f32 to vector<8x384xf32>
    %24 = arith.addf %23, %22 : vector<8x384xf32>
    %25 = arith.divf %23, %24 : vector<8x384xf32>
    %26 = vector.extract_strided_slice %25 {offsets = [0, 0], sizes = [8, 128], strides = [1, 1]} : vector<8x384xf32> to vector<8x128xf32>
    %27 = vector.extract_strided_slice %25 {offsets = [0, 128], sizes = [8, 128], strides = [1, 1]} : vector<8x384xf32> to vector<8x128xf32>
    %28 = vector.extract_strided_slice %25 {offsets = [0, 256], sizes = [8, 128], strides = [1, 1]} : vector<8x384xf32> to vector<8x128xf32>
    %29 = vector.extract_strided_slice %19 {offsets = [0, 384], sizes = [8, 128], strides = [1, 1]} : vector<8x512xf32> to vector<8x128xf32>
    %30 = math.tanh %29 : vector<8x128xf32>
    %c0_19 = arith.constant 0 : index
    %c0_20 = arith.constant 0 : index
    %31 = vector.load %arg8[%c0_19, %c0_20] : memref<8x128xf32, #tpu.memory_space<vmem>>, vector<8x128xf32>
    %32 = arith.mulf %27, %31 : vector<8x128xf32>
    %33 = arith.mulf %26, %30 : vector<8x128xf32>
    %34 = arith.addf %32, %33 : vector<8x128xf32>
    %35 = math.tanh %34 : vector<8x128xf32>
    %36 = arith.mulf %28, %35 : vector<8x128xf32>
    %c0_21 = arith.constant 0 : index
    %c0_22 = arith.constant 0 : index
    %37 = vector.load %arg8[%c0_21, %c0_22] : memref<8x128xf32, #tpu.memory_space<vmem>>, vector<8x128xf32>
    tpu.vector_store %arg8[%c0_21, %c0_22], %34 {strides = array<i32>} : memref<8x128xf32, #tpu.memory_space<vmem>>, vector<8x128xf32>,
    %c0_23 = arith.constant 0 : index
    %c0_24 = arith.constant 0 : index
    %38 = vector.load %arg7[%c0_23, %c0_24] : memref<8x128xf32, #tpu.memory_space<vmem>>, vector<8x128xf32>
    tpu.vector_store %arg7[%c0_23, %c0_24], %36 {strides = array<i32>} : memref<8x128xf32, #tpu.memory_space<vmem>>, vector<8x128xf32>,
    %39 = arith.truncf %36 : vector<8x128xf32> to vector<8x128xbf16>
    %40 = arith.index_cast %c0_i32_10 : i32 to index
    %c0_25 = arith.constant 0 : index
    %c0_26 = arith.constant 0 : index
    %41 = vector.load %arg6[%40, %c0_25, %c0_26] : memref<4x8x128xbf16, #tpu.memory_space<vmem>>, vector<1x8x128xbf16>
    %42 = vector.shape_cast %41 : vector<1x8x128xbf16> to vector<8x128xbf16>
    %43 = vector.shape_cast %39 : vector<8x128xbf16> to vector<1x8x128xbf16>
    tpu.vector_store %arg6[%40, %c0_25, %c0_26], %43 {strides = array<i32>} : memref<4x8x128xbf16, #tpu.memory_space<vmem>>, vector<1x8x128xbf16>,
    %c1_i32 = arith.constant 1 : i32
    %44 = arith.index_cast %c1_i32 : i32 to index
    %c0_27 = arith.constant 0 : index
    %c0_28 = arith.constant 0 : index
    %45 = vector.load %arg9[%44, %c0_27, %c0_28] : memref<4x8x512xf32, #tpu.memory_space<vmem>>, vector<1x8x512xf32>
    %46 = vector.shape_cast %45 : vector<1x8x512xf32> to vector<8x512xf32>
    %c0_29 = arith.constant 0 : index
    %c0_30 = arith.constant 0 : index
    %47 = vector.load %arg7[%c0_29, %c0_30] : memref<8x128xf32, #tpu.memory_space<vmem>>, vector<8x128xf32>
    %48 = arith.truncf %47 : vector<8x128xf32> to vector<8x128xbf16>
    %c0_31 = arith.constant 0 : index
    %c0_32 = arith.constant 0 : index
    %49 = vector.load %arg4[%c0_31, %c0_32] : memref<128x512xbf16, #tpu.memory_space<vmem>>, vector<128x512xbf16>
    %cst_33 = arith.constant dense<0.000000e+00> : vector<8x512xf32>
    %50 = tpu.matmul %48, %49, %cst_33 {dimension_numbers = #tpu.dot_dimension_numbers<[1], [0], [0], [1], [0, 0, 1, 1], [], []>} : vector<8x128xbf16>, vector<128x512xbf16>, vector<8x512xf32> -> vector<8x512xf32>
    %51 = arith.addf %46, %50 : vector<8x512xf32>
    %52 = vector.extract_strided_slice %51 {offsets = [0, 0], sizes = [8, 384], strides = [1, 1]} : vector<8x512xf32> to vector<8x384xf32>
    %53 = arith.negf %52 : vector<8x384xf32>
    %54 = math.exp %53 : vector<8x384xf32>
    %cst_34 = arith.constant 1.000000e+00 : f32
    %55 = vector.broadcast %cst_34 : f32 to vector<8x384xf32>
    %56 = arith.addf %55, %54 : vector<8x384xf32>
    %57 = arith.divf %55, %56 : vector<8x384xf32>
    %58 = vector.extract_strided_slice %57 {offsets = [0, 0], sizes = [8, 128], strides = [1, 1]} : vector<8x384xf32> to vector<8x128xf32>
    %59 = vector.extract_strided_slice %57 {offsets = [0, 128], sizes = [8, 128], strides = [1, 1]} : vector<8x384xf32> to vector<8x128xf32>
    %60 = vector.extract_strided_slice %57 {offsets = [0, 256], sizes = [8, 128], strides = [1, 1]} : vector<8x384xf32> to vector<8x128xf32>
    %61 = vector.extract_strided_slice %51 {offsets = [0, 384], sizes = [8, 128], strides = [1, 1]} : vector<8x512xf32> to vector<8x128xf32>
    %62 = math.tanh %61 : vector<8x128xf32>
    %c0_35 = arith.constant 0 : index
    %c0_36 = arith.constant 0 : index
    %63 = vector.load %arg8[%c0_35, %c0_36] : memref<8x128xf32, #tpu.memory_space<vmem>>, vector<8x128xf32>
    %64 = arith.mulf %59, %63 : vector<8x128xf32>
    %65 = arith.mulf %58, %62 : vector<8x128xf32>
    %66 = arith.addf %64, %65 : vector<8x128xf32>
    %67 = math.tanh %66 : vector<8x128xf32>
    %68 = arith.mulf %60, %67 : vector<8x128xf32>
    %c0_37 = arith.constant 0 : index
    %c0_38 = arith.constant 0 : index
    %69 = vector.load %arg8[%c0_37, %c0_38] : memref<8x128xf32, #tpu.memory_space<vmem>>, vector<8x128xf32>
    tpu.vector_store %arg8[%c0_37, %c0_38], %66 {strides = array<i32>} : memref<8x128xf32, #tpu.memory_space<vmem>>, vector<8x128xf32>,
    %c0_39 = arith.constant 0 : index
    %c0_40 = arith.constant 0 : index
    %70 = vector.load %arg7[%c0_39, %c0_40] : memref<8x128xf32, #tpu.memory_space<vmem>>, vector<8x128xf32>
    tpu.vector_store %arg7[%c0_39, %c0_40], %68 {strides = array<i32>} : memref<8x128xf32, #tpu.memory_space<vmem>>, vector<8x128xf32>,
    %71 = arith.truncf %68 : vector<8x128xf32> to vector<8x128xbf16>
    %72 = arith.index_cast %c1_i32 : i32 to index
    %c0_41 = arith.constant 0 : index
    %c0_42 = arith.constant 0 : index
    %73 = vector.load %arg6[%72, %c0_41, %c0_42] : memref<4x8x128xbf16, #tpu.memory_space<vmem>>, vector<1x8x128xbf16>
    %74 = vector.shape_cast %73 : vector<1x8x128xbf16> to vector<8x128xbf16>
    %75 = vector.shape_cast %71 : vector<8x128xbf16> to vector<1x8x128xbf16>
    tpu.vector_store %arg6[%72, %c0_41, %c0_42], %75 {strides = array<i32>} : memref<4x8x128xbf16, #tpu.memory_space<vmem>>, vector<1x8x128xbf16>,
    %c2_i32 = arith.constant 2 : i32
    %76 = arith.index_cast %c2_i32 : i32 to index
    %c0_43 = arith.constant 0 : index
    %c0_44 = arith.constant 0 : index
    %77 = vector.load %arg9[%76, %c0_43, %c0_44] : memref<4x8x512xf32, #tpu.memory_space<vmem>>, vector<1x8x512xf32>
    %78 = vector.shape_cast %77 : vector<1x8x512xf32> to vector<8x512xf32>
    %c0_45 = arith.constant 0 : index
    %c0_46 = arith.constant 0 : index
    %79 = vector.load %arg7[%c0_45, %c0_46] : memref<8x128xf32, #tpu.memory_space<vmem>>, vector<8x128xf32>
    %80 = arith.truncf %79 : vector<8x128xf32> to vector<8x128xbf16>
    %c0_47 = arith.constant 0 : index
    %c0_48 = arith.constant 0 : index
    %81 = vector.load %arg4[%c0_47, %c0_48] : memref<128x512xbf16, #tpu.memory_space<vmem>>, vector<128x512xbf16>
    %cst_49 = arith.constant dense<0.000000e+00> : vector<8x512xf32>
    %82 = tpu.matmul %80, %81, %cst_49 {dimension_numbers = #tpu.dot_dimension_numbers<[1], [0], [0], [1], [0, 0, 1, 1], [], []>} : vector<8x128xbf16>, vector<128x512xbf16>, vector<8x512xf32> -> vector<8x512xf32>
    %83 = arith.addf %78, %82 : vector<8x512xf32>
    %84 = vector.extract_strided_slice %83 {offsets = [0, 0], sizes = [8, 384], strides = [1, 1]} : vector<8x512xf32> to vector<8x384xf32>
    %85 = arith.negf %84 : vector<8x384xf32>
    %86 = math.exp %85 : vector<8x384xf32>
    %cst_50 = arith.constant 1.000000e+00 : f32
    %87 = vector.broadcast %cst_50 : f32 to vector<8x384xf32>
    %88 = arith.addf %87, %86 : vector<8x384xf32>
    %89 = arith.divf %87, %88 : vector<8x384xf32>
    %90 = vector.extract_strided_slice %89 {offsets = [0, 0], sizes = [8, 128], strides = [1, 1]} : vector<8x384xf32> to vector<8x128xf32>
    %91 = vector.extract_strided_slice %89 {offsets = [0, 128], sizes = [8, 128], strides = [1, 1]} : vector<8x384xf32> to vector<8x128xf32>
    %92 = vector.extract_strided_slice %89 {offsets = [0, 256], sizes = [8, 128], strides = [1, 1]} : vector<8x384xf32> to vector<8x128xf32>
    %93 = vector.extract_strided_slice %83 {offsets = [0, 384], sizes = [8, 128], strides = [1, 1]} : vector<8x512xf32> to vector<8x128xf32>
    %94 = math.tanh %93 : vector<8x128xf32>
    %c0_51 = arith.constant 0 : index
    %c0_52 = arith.constant 0 : index
    %95 = vector.load %arg8[%c0_51, %c0_52] : memref<8x128xf32, #tpu.memory_space<vmem>>, vector<8x128xf32>
    %96 = arith.mulf %91, %95 : vector<8x128xf32>
    %97 = arith.mulf %90, %94 : vector<8x128xf32>
    %98 = arith.addf %96, %97 : vector<8x128xf32>
    %99 = math.tanh %98 : vector<8x128xf32>
    %100 = arith.mulf %92, %99 : vector<8x128xf32>
    %c0_53 = arith.constant 0 : index
    %c0_54 = arith.constant 0 : index
    %101 = vector.load %arg8[%c0_53, %c0_54] : memref<8x128xf32, #tpu.memory_space<vmem>>, vector<8x128xf32>
    tpu.vector_store %arg8[%c0_53, %c0_54], %98 {strides = array<i32>} : memref<8x128xf32, #tpu.memory_space<vmem>>, vector<8x128xf32>,
    %c0_55 = arith.constant 0 : index
    %c0_56 = arith.constant 0 : index
    %102 = vector.load %arg7[%c0_55, %c0_56] : memref<8x128xf32, #tpu.memory_space<vmem>>, vector<8x128xf32>
    tpu.vector_store %arg7[%c0_55, %c0_56], %100 {strides = array<i32>} : memref<8x128xf32, #tpu.memory_space<vmem>>, vector<8x128xf32>,
    %103 = arith.truncf %100 : vector<8x128xf32> to vector<8x128xbf16>
    %104 = arith.index_cast %c2_i32 : i32 to index
    %c0_57 = arith.constant 0 : index
    %c0_58 = arith.constant 0 : index
    %105 = vector.load %arg6[%104, %c0_57, %c0_58] : memref<4x8x128xbf16, #tpu.memory_space<vmem>>, vector<1x8x128xbf16>
    %106 = vector.shape_cast %105 : vector<1x8x128xbf16> to vector<8x128xbf16>
    %107 = vector.shape_cast %103 : vector<8x128xbf16> to vector<1x8x128xbf16>
    tpu.vector_store %arg6[%104, %c0_57, %c0_58], %107 {strides = array<i32>} : memref<4x8x128xbf16, #tpu.memory_space<vmem>>, vector<1x8x128xbf16>,
    %c3_i32 = arith.constant 3 : i32
    %108 = arith.index_cast %c3_i32 : i32 to index
    %c0_59 = arith.constant 0 : index
    %c0_60 = arith.constant 0 : index
    %109 = vector.load %arg9[%108, %c0_59, %c0_60] : memref<4x8x512xf32, #tpu.memory_space<vmem>>, vector<1x8x512xf32>
    %110 = vector.shape_cast %109 : vector<1x8x512xf32> to vector<8x512xf32>
    %c0_61 = arith.constant 0 : index
    %c0_62 = arith.constant 0 : index
    %111 = vector.load %arg7[%c0_61, %c0_62] : memref<8x128xf32, #tpu.memory_space<vmem>>, vector<8x128xf32>
    %112 = arith.truncf %111 : vector<8x128xf32> to vector<8x128xbf16>
    %c0_63 = arith.constant 0 : index
    %c0_64 = arith.constant 0 : index
    %113 = vector.load %arg4[%c0_63, %c0_64] : memref<128x512xbf16, #tpu.memory_space<vmem>>, vector<128x512xbf16>
    %cst_65 = arith.constant dense<0.000000e+00> : vector<8x512xf32>
    %114 = tpu.matmul %112, %113, %cst_65 {dimension_numbers = #tpu.dot_dimension_numbers<[1], [0], [0], [1], [0, 0, 1, 1], [], []>} : vector<8x128xbf16>, vector<128x512xbf16>, vector<8x512xf32> -> vector<8x512xf32>
    %115 = arith.addf %110, %114 : vector<8x512xf32>
    %116 = vector.extract_strided_slice %115 {offsets = [0, 0], sizes = [8, 384], strides = [1, 1]} : vector<8x512xf32> to vector<8x384xf32>
    %117 = arith.negf %116 : vector<8x384xf32>
    %118 = math.exp %117 : vector<8x384xf32>
    %cst_66 = arith.constant 1.000000e+00 : f32
    %119 = vector.broadcast %cst_66 : f32 to vector<8x384xf32>
    %120 = arith.addf %119, %118 : vector<8x384xf32>
    %121 = arith.divf %119, %120 : vector<8x384xf32>
    %122 = vector.extract_strided_slice %121 {offsets = [0, 0], sizes = [8, 128], strides = [1, 1]} : vector<8x384xf32> to vector<8x128xf32>
    %123 = vector.extract_strided_slice %121 {offsets = [0, 128], sizes = [8, 128], strides = [1, 1]} : vector<8x384xf32> to vector<8x128xf32>
    %124 = vector.extract_strided_slice %121 {offsets = [0, 256], sizes = [8, 128], strides = [1, 1]} : vector<8x384xf32> to vector<8x128xf32>
    %125 = vector.extract_strided_slice %115 {offsets = [0, 384], sizes = [8, 128], strides = [1, 1]} : vector<8x512xf32> to vector<8x128xf32>
    %126 = math.tanh %125 : vector<8x128xf32>
    %c0_67 = arith.constant 0 : index
    %c0_68 = arith.constant 0 : index
    %127 = vector.load %arg8[%c0_67, %c0_68] : memref<8x128xf32, #tpu.memory_space<vmem>>, vector<8x128xf32>
    %128 = arith.mulf %123, %127 : vector<8x128xf32>
    %129 = arith.mulf %122, %126 : vector<8x128xf32>
    %130 = arith.addf %128, %129 : vector<8x128xf32>
    %131 = math.tanh %130 : vector<8x128xf32>
    %132 = arith.mulf %124, %131 : vector<8x128xf32>
    %c0_69 = arith.constant 0 : index
    %c0_70 = arith.constant 0 : index
    %133 = vector.load %arg8[%c0_69, %c0_70] : memref<8x128xf32, #tpu.memory_space<vmem>>, vector<8x128xf32>
    tpu.vector_store %arg8[%c0_69, %c0_70], %130 {strides = array<i32>} : memref<8x128xf32, #tpu.memory_space<vmem>>, vector<8x128xf32>,
    %c0_71 = arith.constant 0 : index
    %c0_72 = arith.constant 0 : index
    %134 = vector.load %arg7[%c0_71, %c0_72] : memref<8x128xf32, #tpu.memory_space<vmem>>, vector<8x128xf32>
    tpu.vector_store %arg7[%c0_71, %c0_72], %132 {strides = array<i32>} : memref<8x128xf32, #tpu.memory_space<vmem>>, vector<8x128xf32>,
    %135 = arith.truncf %132 : vector<8x128xf32> to vector<8x128xbf16>
    %136 = arith.index_cast %c3_i32 : i32 to index
    %c0_73 = arith.constant 0 : index
    %c0_74 = arith.constant 0 : index
    %137 = vector.load %arg6[%136, %c0_73, %c0_74] : memref<4x8x128xbf16, #tpu.memory_space<vmem>>, vector<1x8x128xbf16>
    %138 = vector.shape_cast %137 : vector<1x8x128xbf16> to vector<8x128xbf16>
    %139 = vector.shape_cast %135 : vector<8x128xbf16> to vector<1x8x128xbf16>
    tpu.vector_store %arg6[%136, %c0_73, %c0_74], %139 {strides = array<i32>} : memref<4x8x128xbf16, #tpu.memory_space<vmem>>, vector<1x8x128xbf16>,
    %c4_i32 = arith.constant 4 : i32
    return
  }
  func.func @transform_0(%arg0: i32, %arg1: i32) -> (i32, i32, i32) {
    %c0_i32 = arith.constant 0 : i32
    %c0_i32_0 = arith.constant 0 : i32
    return %arg1, %arg0, %c0_i32 : i32, i32, i32
  }
  func.func @transform_1(%arg0: i32, %arg1: i32) -> (i32, i32) {
    %c0_i32 = arith.constant 0 : i32
    %c0_i32_0 = arith.constant 0 : i32
    %c0_i32_1 = arith.constant 0 : i32
    return %c0_i32, %c0_i32_0 : i32, i32
  }
  func.func @transform_2(%arg0: i32, %arg1: i32) -> (i32, i32) {
    %c0_i32 = arith.constant 0 : i32
    %c0_i32_0 = arith.constant 0 : i32
    %c0_i32_1 = arith.constant 0 : i32
    return %c0_i32, %c0_i32_0 : i32, i32
  }
  func.func @transform_3(%arg0: i32, %arg1: i32) -> (i32, i32) {
    %c0_i32 = arith.constant 0 : i32
    %c0_i32_0 = arith.constant 0 : i32
    %c0_i32_1 = arith.constant 0 : i32
    return %c0_i32, %c0_i32_0 : i32, i32
  }
  func.func @transform_4(%arg0: i32, %arg1: i32) -> (i32, i32, i32) {
    %c0_i32 = arith.constant 0 : i32
    %c0_i32_0 = arith.constant 0 : i32
    return %arg1, %arg0, %c0_i32 : i32, i32, i32
  }
}

</mosaic_0001>

<bundles_post_ra>
// kernel: tpu_custom_call.1
= control target key start
LH: loop header
LB: loop body
LE: loop exit
PB: predicated region body
PF: predicated region fallthrough
CT: control target
= control target key end

     0   :  { %9 = vsyncpa [#allocation6], 0  ;;  %s3271_s0 = inlined_call_operand.hbm [shape: bf16[8,8,128], index: 0, kind: input, shape index: {}]   ;;  %s3272_s1 = inlined_call_operand.hbm [shape: bf16[128,512], index: 1, kind: input, shape index: {}]   ;;  %s3273_s2 = inlined_call_operand.hbm [shape: bf16[128,512], index: 2, kind: input, shape index: {}]   ;;  %s3274_s3 = inlined_call_operand.hbm [shape: f32[1,512], index: 3, kind: input, shape index: {}]   ;;  %s3275_s4 = inlined_call_operand.hbm [shape: bf16[8,8,128], index: 4, kind: output, shape index: {}]  }
   0x1   :  { %11 = vsyncpa [#allocation6 + $0x1], 0 }
   0x2   :  { %12 = vsyncpa [#allocation9], 0 }
   0x3   :  { %13 = vsyncpa [#allocation12], 0 }
   0x4   :  { %14 = vsyncpa [#allocation7], 0 }
   0x5   :  { %16 = vsyncpa [#allocation7 + $0x1], 0  ;;  %s2731_s15 = smov 0   ;;  %s2733_s16 = smov 0  }
   0x6   :  { %s2735_s17 = smov 0   ;;  %s2737_s18 = smov 0  }
   0x7   :  { %s2739_s19 = smov 0   ;;  %s2741_s20 = smov 0  }
   0x8 LB: > { %s2023_s21 = sadd.s32 4294967295, %s2691_s20   ;;  %s2024_s22 = sadd.s32 4294967294, %s2691_s20   ;;  %s2691_s20 = sphi %s2741_s20, %s22_s20   ;;  %s2687_s19 = sphi %s2739_s19, %s3319_s19   ;;  %s2683_s18 = sphi %s2737_s18, %s3318_s18   ;;  %s2679_s17 = sphi %s2735_s17, %s3317_s17   ;;  %s2675_s16 = sphi %s2733_s16, %s3316_s16   ;;  %s2671_s15 = sphi %s2731_s15, %s3315_s15  }
   0x9   : > { %p56_p0 = scmp.ne.s32.totalorder %s2675_s16, %s2671_s15  ;;  %p2765_p1 = scmp.eq.s32.totalorder %s2023_s21, 0 }
   0xa   : > { %p2769_p2 = scmp.eq.s32.totalorder %s2023_s21, 1  ;;  %p151_p3 = scmp.eq.s32.totalorder %s2024_s22, 1 }
   0xb   : > { %s3283_s23 = scalar_select %p2765_p1, 1, 0 }
   0xc   : > { %s3284_s24 = scalar_select %p2769_p2, 1, 0 }
   0xd   : > { %p2775_p4 = por %p2765_p1, %p56_p0  ;;  %p2025_p5 = scmp.ge.s32.totalorder %s2691_s20, 1 }
   0xe   : > { %p2780_p6 = por %p151_p3, %p56_p0  ;;  %p158_p7 = scmp.lt.s32.totalorder %s2691_s20, 3 }
   0xf   : > { %s3285_s25 = scalar_select %p2775_p4, 1, 0 }
  0x10   : > { %s3286_s26 = scalar_select %p2780_p6, 1, 0 }
  0x11   : > { %p2785_p8 = pnand %p2025_p5, %p158_p7  ;;  %s2693_s28 = smov [#allocation8]  }
  0x12   : > { %3287 = sst [smem:[#allocation18_spill]] %s3286_s26  ;;  %s170_s29 = sshll.u32 %s2693_s28, 4  ;;  %s2789_s29 = int_to_ptr.vmem [resolvable:$true] %s170_s29 }
  0x13   : > { %s3288_s27 = scalar_select %p2785_p8, 1, 0 }
  0x14   : > { %p2240_p9 = pneg %p2785_p8  ;;  %s2694_s5 = smov [#allocation10]  }
  0x15   : > { %s183_s6 = sshll.u32 %s2694_s5, 4  ;;  %s2695_s7 = smov [#allocation11]   ;;  %s2800_s6 = int_to_ptr.vmem [resolvable:$true] %s183_s6 }
  0x16   : > { %p2796_p11 = pnand %p2240_p9, %p2765_p1  ;;  %s2802_s8 = sshll.u32 %s2695_s7, 4  ;;  %s198_s8 = int_to_ptr.vmem [resolvable:$true] %s2802_s8 }
  0x17   : > { %s2487_s11 = scalar_lea.hbm %s3272_s1, 4096 }
  0x18   : > { %p2488_p12 = scmp.ne.s32.totalorder %s3272_s1, %s2487_s11  ;;  %p2812_p13 = pneg %p2796_p11 }
  0x19   : > { %p2494_p5 = scmp.lt.u32.totalorder %s2487_s11, %s3272_s1 }
  0x1a   : > { %p2490_p0 = pnand %p2812_p13, %p2488_p12 }
  0x1c   : > { %p2491_p3 = pneg %p2490_p0 }
  0x1e   : > { %p2496_p7 = pnand %p2494_p5, %p2491_p3 }
  0x20   : > { %2499 = shalt.err (!%p2496_p7)
}
  0x21   : > { %s2500_s28 = scalar_lea.vmem %s2789_s29, 4096  ;;  %p2508_p1 = scmp.lt.s32.totalorder %s2789_s29, %s2789_s29 }
  0x22   : > { %p2501_p9 = scmp.ne.s32.totalorder %s2789_s29, %s2500_s28  ;;  %p2509_p4 = scmp.lt.s32.totalorder %s2500_s28, %s2500_s28 }
  0x24   : > { %p2503_p10 = pnand %p2501_p9, %p2812_p13  ;;  %p2510_p12 = por %p2509_p4, %p2508_p1 }
  0x26   : > { %p2504_p6 = pneg %p2503_p10 }
  0x28   : > { %p2511_p0 = pnand %p2510_p12, %p2504_p6 }
  0x2a   : > { %2514 = shalt.err (!%p2511_p0)
}
  0x2b   : > { %s2696_s5 = smov 256   ;;  %s2697_s7 = smov 16  }
  0x2c   : > { %2243 = dma.hbm_to_vmem [thread:$0]  (!%p2796_p11), %s3272_s1, 4096, %s2789_s29, [#allocation9], %s2696_s5, %s2696_s5, %s2697_s7  }
  0x2d   : > { %s2515_s13 = scalar_lea.hbm %s3273_s2, 4096 }
  0x2e   : > { %p2516_p1 = scmp.ne.s32.totalorder %s3273_s2, %s2515_s13  ;;  %p2522_p10 = scmp.lt.u32.totalorder %s2515_s13, %s3273_s2 }
  0x30   : > { %p2518_p4 = pnand %p2516_p1, %p2812_p13 }
  0x32   : > { %p2519_p6 = pneg %p2518_p4 }
  0x34   : > { %p2524_p3 = pnand %p2522_p10, %p2519_p6 }
  0x36   : > { %2527 = shalt.err (!%p2524_p3)
}
  0x37   : > { %s2528_s29 = scalar_lea.vmem %s2800_s6, 4096  ;;  %p2536_p12 = scmp.lt.s32.totalorder %s2800_s6, %s2800_s6 }
  0x38   : > { %p2529_p5 = scmp.ne.s32.totalorder %s2800_s6, %s2528_s29  ;;  %p2537_p0 = scmp.lt.s32.totalorder %s2528_s29, %s2528_s29 }
  0x3a   : > { %p2531_p7 = pnand %p2529_p5, %p2812_p13  ;;  %p2538_p1 = por %p2537_p0, %p2536_p12 }
  0x3c   : > { %p2532_p9 = pneg %p2531_p7 }
  0x3e   : > { %p2539_p4 = pnand %p2538_p1, %p2532_p9 }
  0x40   : > { %2542 = shalt.err (!%p2539_p4)
}
  0x41   : > { %2246 = dma.hbm_to_vmem [thread:$0]  (!%p2796_p11), %s3273_s2, 4096, %s2800_s6, [#allocation9], %s2696_s5, %s2696_s5, %s2697_s7  }
  0x42   : > { %s2543_s12 = scalar_lea.hbm %s3274_s3, 64 }
  0x43   : > { %p2544_p6 = scmp.ne.s32.totalorder %s3274_s3, %s2543_s12  ;;  %p2550_p5 = scmp.lt.u32.totalorder %s2543_s12, %s3274_s3 }
  0x45   : > { %p2546_p10 = pnand %p2544_p6, %p2812_p13 }
  0x47   : > { %p2547_p3 = pneg %p2546_p10 }
  0x49   : > { %p2552_p7 = pnand %p2550_p5, %p2547_p3 }
  0x4b   : > { %2555 = shalt.err (!%p2552_p7)
}
  0x4c   : > { %s2556_s29 = scalar_lea.vmem %s198_s8, 64  ;;  %p2564_p1 = scmp.lt.s32.totalorder %s198_s8, %s198_s8 }
  0x4d   : > { %p2557_p9 = scmp.ne.s32.totalorder %s198_s8, %s2556_s29  ;;  %p2565_p4 = scmp.lt.s32.totalorder %s2556_s29, %s2556_s29 }
  0x4f   : > { %p2559_p12 = pnand %p2557_p9, %p2812_p13  ;;  %p2566_p8 = por %p2565_p4, %p2564_p1 }
  0x51   : > { %p2560_p0 = pneg %p2559_p12 }
  0x53   : > { %p2567_p2 = pnand %p2566_p8, %p2560_p0 }
  0x55   : > { %2570 = shalt.err (!%p2567_p2)
}
  0x56   : > { %2249 = dma.hbm_to_vmem [thread:$0]  (!%p2796_p11), %s3274_s3, 64, %s198_s8, [#allocation12]  }
  0x57   : > { %s43_s14 = sadd.s32 1, %s2679_s17  ;;  %s31_s7 = sadd.s32 1, %s2687_s19 }
  0x58   : > { %p50_p2 = scmp.ne.s32.totalorder %s2679_s17, %s2675_s16  ;;  %p32_p8 = scmp.ge.s32.totalorder %s31_s7, 2 }
  0x59   : > { %p51_p13 = scmp.eq.s32.totalorder %s2691_s20, 0  ;;  %p3291_p6 = scmp.ne.s32.totalorder %s3284_s24, 0 }
  0x5a   : > { %p2261_p3 = scmp.lt.s32.totalorder %s2691_s20, 2  ;;  %s3321_s7 = smov (%p32_p8, %s31_s7), 0 }
  0x5b   : > { %p2882_p10 = por %p3291_p6, %p50_p2  ;;  %p52_p5 = por %p51_p13, %p50_p2 }
  0x5c   : > { %s208_s26 = sand.u32 1, %s2679_s17   ;;  %s38_s9 = ssub.s32 %s2687_s19, %s3321_s7 }
  0x5d   : > { %p41_p7 = scmp.eq.s32.totalorder %s38_s9, 0  ;;  %s2030_s8 = sshll.u32 %s208_s26, 4 }
  0x5e   : > { %s2222_s10 = sshll.u32 %s2687_s19, 8  ;;  %s212_s21 = scalar_lea.vmem [#allocation5], %s2030_s8 }
  0x5f   : > { %s2894_s11 = scalar_select %p41_p7, %s2679_s17, %s43_s14  }
  0x60   : > { %s2899_s24 = scalar_lea.hbm %s3271_s0, %s2222_s10  ;;  %s220_s22 = sshll.u32 %s212_s21, 4  ;;  %s2901_s22 = int_to_ptr.vmem [resolvable:$true] %s220_s22 }
  0x61   : > { %p2905_p11 = pnand %p2261_p3, %p52_p5  ;;  %s2909_s29 = scalar_lea.sflag [#allocation6], %s208_s26 }
  0x62   : > { %s2571_s6 = scalar_lea.hbm %s2899_s24, 256  ;;  %s2576_s9 = scalar_lea.hbm %s3271_s0, 512 }
  0x63   : > { %p2572_p9 = scmp.ne.s32.totalorder %s2899_s24, %s2571_s6  ;;  %p2573_p12 = pneg %p2905_p11 }
  0x64   : > { %p2577_p4 = scmp.lt.u32.totalorder %s2899_s24, %s3271_s0  ;;  %p2578_p2 = scmp.lt.u32.totalorder %s2576_s9, %s2571_s6 }
  0x65   : > { %p2574_p0 = pnand %p2573_p12, %p2572_p9  ;;  %p2580_p13 = scmp.lt.u32.totalorder %s2571_s6, %s2899_s24 }
  0x66   : > { %p2579_p8 = por %p2578_p2, %p2577_p4 }
  0x67   : > { %p2575_p1 = pneg %p2574_p0 }
  0x68   : > { %p2581_p6 = por %p2580_p13, %p2579_p8 }
  0x6a   : > { %p2582_p3 = pnand %p2581_p6, %p2575_p1 }
  0x6c   : > { %2585 = shalt.err (!%p2582_p3)
}
  0x6d   : > { %s2586_s26 = scalar_lea.vmem %s2901_s22, 256  ;;  %s2698_s12 = smov [#allocation5]  }
  0x6e   : > { %p2587_p5 = scmp.ne.s32.totalorder %s2901_s22, %s2586_s26  ;;  %s2591_s13 = sshll.u32 %s2698_s12, 4  ;;  %s2592_s13 = int_to_ptr.vmem [resolvable:$false] %s2591_s13 }
  0x6f   : > { %s2593_s21 = scalar_lea.vmem %s2592_s13, 512  ;;  %p2594_p0 = scmp.lt.s32.totalorder %s2901_s22, %s2592_s13 }
  0x70   : > { %p2589_p7 = pnand %p2587_p5, %p2573_p12  ;;  %p2595_p4 = scmp.lt.s32.totalorder %s2593_s21, %s2586_s26 }
  0x72   : > { %p2590_p9 = pneg %p2589_p7  ;;  %p2596_p2 = por %p2595_p4, %p2594_p0 }
  0x74   : > { %p2597_p8 = pnand %p2596_p2, %p2590_p9 }
  0x76   : > { %2600 = shalt.err (!%p2597_p8)
}
  0x77   : > { %s2699_s6 = smov 64   ;;  %s2700_s5 = smov 4  }
  0x78   : > { %2253 = dma.hbm_to_vmem [thread:$0]  (!%p2905_p11), %s2899_s24, 256, %s2901_s22, %s2909_s29, %s2699_s6, %s2699_s6, %s2700_s5  }
  0x79   : > { %p3294_p12 = scmp.ne.s32.totalorder %s3288_s27, 0 }
  0x7b   : > { %232 = sbr.rel (%p3294_p12) target bundleno = 1269 (0x4f5), region = 36 }
  0x82   : > { %s2940_s14 = sand.u32 1, %s2675_s16   ;;  %p3295_p1 = scmp.ne.s32.totalorder %s3285_s25, 0 }
  0x83   : > { %s2034_s9 = sshll.u32 %s2940_s14, 4  ;;  %s235_s8 = scalar_lea.sflag [#allocation6], %s2940_s14 }
  0x84   : > { %s2944_s10 = scalar_lea.vmem [#allocation5], %s2034_s9 }
  0x85   : > { %2654 = dma.done.wait (%p3295_p1), %s235_s8, 256  }
  0x86   : > { %2656 = vsyncadd (%p3295_p1), %s235_s8, 4294967040  ;;  %p3296_p11 = scmp.ne.s32.totalorder %s3283_s23, 0 }
  0x88   : > { %2658 = dma.done.wait (%p3296_p11), [#allocation9], 8192  }
  0x89   : > { %2660 = vsyncadd (%p3296_p11), [#allocation9], 4294959104 }
  0x8a   : > { %2662 = dma.done.wait (%p3296_p11), [#allocation12], 64  }
  0x8b   : > { %2664 = vsyncadd (%p3296_p11), [#allocation12], 4294967232  ;;  %s2958_s27 = scalar_lea.vmem [#allocation13], %s2034_s9  ;;  %p2039_p13 = scmp.ne.s32.totalorder %s2683_s18, 0 }
  0x8c   : > { %v2701_v0 = vmov (!%p2039_p13), 0.0  }
  0x8d   : > { %281 = sbr.rel (%p2039_p13) target bundleno = 148 (0x94), region = 56  ;;  %282 = vst [vmem:[#allocation2] sm:$0xff] (!%p2039_p13), %v2701_v0  ;;  %283 = vst [vmem:[#allocation3] sm:$0xff] (!%p2039_p13), %v2701_v0 }
  0x94 PF: > { %v2325_v1 = vld [vmem:[#allocation8 + $0x4] ss:$16 sps:$4 sm:$0xff]   ;;  %v2327_v2 = vld [vmem:[#allocation8 + $0xc] ss:$16 sps:$4 sm:$0xff]   ;;  %v3281_v3 = vmov 0   ;;  %s2223_s23 = sshll.u32 %s2683_s18, 8 }
  0x95   : > { %546 = vmatprep.mubr.bf16.mxu0 %v3281_v3  ;;  %599 = vmatprep.mubr.bf16.mxu1 %v3281_v3  ;;  %v2329_v4 = vld [vmem:[#allocation8] ss:$16 sps:$4 sm:$0xff]   ;;  %v2330_v5 = vld [vmem:[#allocation8 + $0x8] ss:$16 sps:$4 sm:$0xff]   ;;  %v2331_v6 = vld [vmem:[#allocation8 + $0x24] ss:$16 sps:$4 sm:$0xff]   ;;  %s3219_s28 = scalar_lea.hbm %s3275_s4, %s2223_s23 }
  0x96   : > { %514 = vmatprep.subr.bf16.mxu0 %v2325_v1  ;;  %567 = vmatprep.subr.bf16.mxu1 %v2327_v2  ;;  %v2333_v7 = vld [vmem:[#allocation8 + $0x2c] ss:$16 sps:$4 sm:$0xff]   ;;  %v2335_v8 = vld [vmem:[#allocation8 + $0x20] ss:$16 sps:$4 sm:$0xff]   ;;  %v2336_v9 = vld [vmem:[#allocation8 + $0x28] ss:$16 sps:$4 sm:$0xff]  }
  0x97   : > { %515 = vmatpush1.bf16.msra.mxu0 %v2329_v4  ;;  %568 = vmatpush1.bf16.msra.mxu1 %v2330_v5  ;;  %v2337_v10 = vld [vmem:[#allocation8 + $0x44] ss:$16 sps:$4 sm:$0xff]   ;;  %v2339_v11 = vld [vmem:[#allocation8 + $0x4c] ss:$16 sps:$4 sm:$0xff]   ;;  %v2341_v12 = vld [vmem:[#allocation8 + $0x40] ss:$16 sps:$4 sm:$0xff]  }
  0x98   : > { %516 = vmatprep.subr.bf16.mxu0 %v2331_v6  ;;  %569 = vmatprep.subr.bf16.mxu1 %v2333_v7  ;;  %v2342_v13 = vld [vmem:[#allocation8 + $0x48] ss:$16 sps:$4 sm:$0xff]   ;;  %v2343_v14 = vld [vmem:[#allocation8 + $0x64] ss:$16 sps:$4 sm:$0xff]   ;;  %v2345_v15 = vld [vmem:[#allocation8 + $0x6c] ss:$16 sps:$4 sm:$0xff]   ;;  %v322_v7 = vlaneseq }
  0x99   : > { %v2347_v16 = vld [vmem:[#allocation8 + $0x60] ss:$16 sps:$4 sm:$0xff]   ;;  %v2348_v17 = vld [vmem:[#allocation8 + $0x68] ss:$16 sps:$4 sm:$0xff]   ;;  %v2349_v18 = vld [vmem:[#allocation8 + $0x84] ss:$16 sps:$4 sm:$0xff]  }
  0x9a   : > { %v2351_v19 = vld [vmem:[#allocation8 + $0x8c] ss:$16 sps:$4 sm:$0xff]   ;;  %v2353_v20 = vld [vmem:[#allocation8 + $0x80] ss:$16 sps:$4 sm:$0xff]   ;;  %v2354_v21 = vld [vmem:[#allocation8 + $0x88] ss:$16 sps:$4 sm:$0xff]  }
  0x9b   : > { %517 = vmatpush1.bf16.msra.mxu0 %v2335_v8  ;;  %570 = vmatpush1.bf16.msra.mxu1 %v2336_v9  ;;  %v2355_v22 = vld [vmem:[#allocation8 + $0xa4] ss:$16 sps:$4 sm:$0xff]   ;;  %v2357_v23 = vld [vmem:[#allocation8 + $0xac] ss:$16 sps:$4 sm:$0xff]   ;;  %v2359_v24 = vld [vmem:[#allocation8 + $0xa0] ss:$16 sps:$4 sm:$0xff]  }
  0x9c   : > { %518 = vmatprep.subr.bf16.mxu0 %v2337_v10  ;;  %571 = vmatprep.subr.bf16.mxu1 %v2339_v11  ;;  %v2360_v25 = vld [vmem:[#allocation8 + $0xa8] ss:$16 sps:$4 sm:$0xff]   ;;  %v2361_v26 = vld [vmem:[#allocation8 + $0xc4] ss:$16 sps:$4 sm:$0xff]   ;;  %v2363_v27 = vld [vmem:[#allocation8 + $0xcc] ss:$16 sps:$4 sm:$0xff]  }
  0x9d   : > { %v2365_v28 = vld [vmem:[#allocation8 + $0xc0] ss:$16 sps:$4 sm:$0xff]   ;;  %v2366_v29 = vld [vmem:[#allocation8 + $0xc8] ss:$16 sps:$4 sm:$0xff]   ;;  %v2367_v30 = vld [vmem:[#allocation8 + $0xe4] ss:$16 sps:$4 sm:$0xff]  }
  0x9e   : > { %v2369_v31 = vld [vmem:[#allocation8 + $0xec] ss:$16 sps:$4 sm:$0xff]   ;;  %v2371_v32 = vld [vmem:[#allocation8 + $0xe0] ss:$16 sps:$4 sm:$0xff]   ;;  %v2372_v33 = vld [vmem:[#allocation8 + $0xe8] ss:$16 sps:$4 sm:$0xff]  }
  0x9f   : > { %519 = vmatpush1.bf16.msra.mxu0 %v2341_v12  ;;  %572 = vmatpush1.bf16.msra.mxu1 %v2342_v13  ;;  %v2963_v34 = vld [vmem:[#allocation10 + $0x4] ss:$16 sps:$4 sm:$0xff]   ;;  %v2965_v35 = vld [vmem:[#allocation10 + $0xc] ss:$16 sps:$4 sm:$0xff]   ;;  %v2968_v37 = vld [vmem:[#allocation10] ss:$16 sps:$4 sm:$0xff]  }
  0xa0   : > { %520 = vmatprep.subr.bf16.mxu0 %v2343_v14  ;;  %573 = vmatprep.subr.bf16.mxu1 %v2345_v15  ;;  %v2373_v36 = vld [vmem:[%s2944_s10] sm:$0xff]   ;;  %v2970_v38 = vld [vmem:[#allocation10 + $0x8] ss:$16 sps:$4 sm:$0xff]   ;;  %v2976_v40 = vld [vmem:[#allocation10 + $0x2c] ss:$16 sps:$4 sm:$0xff]   ;;  %v323_v8 = vshrl.u32 %v322_v7, 7 }
  0xa1   : > { %v2972_v39 = vld [vmem:[#allocation10 + $0x24] ss:$16 sps:$4 sm:$0xff]   ;;  %v2978_v41 = vld [vmem:[#allocation10 + $0x20] ss:$16 sps:$4 sm:$0xff]   ;;  %v2982_v42 = vld [vmem:[#allocation10 + $0x28] ss:$16 sps:$4 sm:$0xff]  }
  0xa2   : > { %v2984_v43 = vld [vmem:[#allocation10 + $0x44] ss:$16 sps:$4 sm:$0xff]   ;;  %v2988_v44 = vld [vmem:[#allocation10 + $0x4c] ss:$16 sps:$4 sm:$0xff]   ;;  %v2995_v46 = vld [vmem:[#allocation10 + $0x40] ss:$16 sps:$4 sm:$0xff]  }
  0xa3   : > { %521 = vmatpush1.bf16.msra.mxu0 %v2347_v16  ;;  %574 = vmatpush1.bf16.msra.mxu1 %v2348_v17  ;;  %v2410_v45 = vld [vmem:[%s2944_s10 + $0x8] sm:$0xff]   ;;  %v3001_v48 = vld [vmem:[#allocation10 + $0x64] ss:$16 sps:$4 sm:$0xff]   ;;  %v3007_v50 = vld [vmem:[#allocation10 + $0x60] ss:$16 sps:$4 sm:$0xff]   ;;  %v324_v9 = vsub.s32 0, %v323_v8 }
  0xa4   : > { %522 = vmatprep.subr.bf16.mxu0 %v2349_v18  ;;  %575 = vmatprep.subr.bf16.mxu1 %v2351_v19  ;;  %v2997_v47 = vld [vmem:[#allocation10 + $0x48] ss:$16 sps:$4 sm:$0xff]   ;;  %v3003_v49 = vld [vmem:[#allocation10 + $0x6c] ss:$16 sps:$4 sm:$0xff]   ;;  %v3013_v52 = vld [vmem:[#allocation10 + $0x84] ss:$16 sps:$4 sm:$0xff]  }
  0xa5   : > { %v3009_v51 = vld [vmem:[#allocation10 + $0x68] ss:$16 sps:$4 sm:$0xff]   ;;  %v3015_v53 = vld [vmem:[#allocation10 + $0x8c] ss:$16 sps:$4 sm:$0xff]   ;;  %v3021_v54 = vld [vmem:[#allocation10 + $0x80] ss:$16 sps:$4 sm:$0xff]  }
  0xa6   : > { %v3023_v55 = vld [vmem:[#allocation10 + $0x88] ss:$16 sps:$4 sm:$0xff]   ;;  %v3027_v56 = vld [vmem:[#allocation10 + $0xa4] ss:$16 sps:$4 sm:$0xff]   ;;  %v3029_v57 = vld [vmem:[#allocation10 + $0xac] ss:$16 sps:$4 sm:$0xff]  }
  0xa7   : > { %523 = vmatpush1.bf16.msra.mxu0 %v2353_v20  ;;  %576 = vmatpush1.bf16.msra.mxu1 %v2354_v21  ;;  %v3033_v58 = vld [vmem:[#allocation10 + $0xa0] ss:$16 sps:$4 sm:$0xff]   ;;  %v3035_v59 = vld [vmem:[#allocation10 + $0xa8] ss:$16 sps:$4 sm:$0xff]   ;;  %v3039_v60 = vld [vmem:[#allocation10 + $0xc4] ss:$16 sps:$4 sm:$0xff]  }
  0xa8   : > { %524 = vmatprep.subr.bf16.mxu0 %v2355_v22  ;;  %577 = vmatprep.subr.bf16.mxu1 %v2357_v23  ;;  %v3041_v61 = vld [vmem:[#allocation10 + $0xcc] ss:$16 sps:$4 sm:$0xff]   ;;  %v3045_v62 = vld [vmem:[#allocation10 + $0xc0] ss:$16 sps:$4 sm:$0xff]   ;;  %v3047_v63 = vld [vmem:[#allocation10 + $0xc8] ss:$16 sps:$4 sm:$0xff]  }
  0xa9   : > { %v3051_v0 = vld [vmem:[#allocation10 + $0xe4] ss:$16 sps:$4 sm:$0xff]   ;;  %v3053_v1 = vld [vmem:[#allocation10 + $0xec] ss:$16 sps:$4 sm:$0xff]   ;;  %v3057_v2 = vld [vmem:[#allocation10 + $0xe0] ss:$16 sps:$4 sm:$0xff]  }
  0xaa   : > { %v3059_v4 = vld [vmem:[#allocation10 + $0xe8] ss:$16 sps:$4 sm:$0xff]   ;;  %v640_v5 = vld [vmem:[#allocation2] sm:$0xff]  ;;  %v332_v10 = vsub.s32 2, %v323_v8  ;;  %v320_v11 = vld [vmem:[#allocation11] sm:$0xf] }
  0xab   : > { %525 = vmatpush1.bf16.msra.mxu0 %v2359_v24  ;;  %578 = vmatpush1.bf16.msra.mxu1 %v2360_v25  ;;  %v641_v6 = vpack.c.bf16 %v640_v5, %v640_v5  ;;  %v336_v12 = vsub.s32 3, %v323_v8  ;;  %v328_v13 = vsub.s32 1, %v323_v8  ;;  %v325_v14 = vrot.slane %v320_v11, %v324_v9  ;;  %s1909_s25 = sshll.u32 %s2958_s27, 4  ;;  %s1895_s29 = scalar_lea.sflag [#allocation7], %s2940_s14  ;;  %s3221_s25 = int_to_ptr.vmem [resolvable:$true] %s1909_s25 }
  0xac   : > { %526 = vmatprep.subr.bf16.mxu0 %v2361_v26  ;;  %579 = vmatprep.subr.bf16.mxu1 %v2363_v27  ;;  %v333_v15 = vrot.slane %v320_v11, %v332_v10  ;;  %s2601_s26 = scalar_lea.vmem %s3221_s25, 256  ;;  %s2703_s18 = smov [#allocation13]  }
  0xad   : > { %v337_v18 = vrot.slane %v320_v11, %v336_v12  ;;  %v329_v21 = vrot.slane %v320_v11, %v328_v13  ;;  %p2602_p6 = scmp.ne.s32.totalorder %s3221_s25, %s2601_s26  ;;  %s2605_s12 = sshll.u32 %s2703_s18, 4  ;;  %s2606_s12 = int_to_ptr.vmem [resolvable:$false] %s2605_s12 }
  0xae   : > { %s2607_s13 = scalar_lea.vmem %s2606_s12, 512  ;;  %p2608_p7 = scmp.lt.s32.totalorder %s3221_s25, %s2606_s12 }
  0xaf   : > { %527 = vmatpush1.bf16.msra.mxu0 %v2365_v28  ;;  %580 = vmatpush1.bf16.msra.mxu1 %v2366_v29  ;;  %p2603_p3 = pnand %p2602_p6, %p2882_p10  ;;  %p2609_p9 = scmp.lt.s32.totalorder %s2607_s13, %s2601_s26 }
  0xb0   : > { %528 = vmatprep.subr.bf16.mxu0 %v2367_v30  ;;  %581 = vmatprep.subr.bf16.mxu1 %v2369_v31 }
  0xb1   : > { %p2604_p5 = pneg %p2603_p3  ;;  %p2610_p0 = por %p2609_p9, %p2608_p7 }
  0xb3   : > { %529 = vmatpush1.bf16.msra.mxu0 %v2371_v32  ;;  %582 = vmatpush1.bf16.msra.mxu1 %v2372_v33  ;;  %p2611_p4 = pnand %p2610_p0, %p2604_p5 }
  0xb4   : > { %834 = vmatprep.subr.bf16.mxu0 %v2963_v34  ;;  %875 = vmatprep.subr.bf16.mxu1 %v2965_v35 }
  0xb6   : > { %547 = vmatmul.mubr.bf16.vlgmr.msra.gmra.mrb[0].mxu0 %v2373_v36  ;;  %600 = vmatmul.mubr.bf16.vlgmr.msra.gmra.mrb[0].mxu1 %v2373_v36 }
  0xb7   : > { %835 = vmatpush1.bf16.msra.mxu0 %v2968_v37  ;;  %876 = vmatpush1.bf16.msra.mxu1 %v2970_v38 }
  0xb8   : > { %836 = vmatprep.subr.bf16.mxu0 %v2972_v39  ;;  %877 = vmatprep.subr.bf16.mxu1 %v2976_v40 }
  0xb9   : > { %556 = vmatprep.mubr.bf16.mxu0 %v3281_v3  ;;  %609 = vmatprep.mubr.bf16.mxu1 %v3281_v3 }
  0xbb   : > { %837 = vmatpush1.bf16.msra.mxu0 %v2978_v41  ;;  %878 = vmatpush1.bf16.msra.mxu1 %v2982_v42 }
  0xbc   : > { %838 = vmatprep.subr.bf16.mxu0 %v2984_v43  ;;  %879 = vmatprep.subr.bf16.mxu1 %v2988_v44 }
  0xbe   : > { %557 = vmatmul.mubr.bf16.gmra.mrb[4].mxu0 %v2410_v45  ;;  %610 = vmatmul.mubr.bf16.gmra.mrb[4].mxu1 %v2410_v45 }
  0xbf   : > { %839 = vmatpush1.bf16.msra.mxu0 %v2995_v46  ;;  %880 = vmatpush1.bf16.msra.mxu1 %v2997_v47 }
  0xc0   : > { %840 = vmatprep.subr.bf16.mxu0 %v3001_v48  ;;  %881 = vmatprep.subr.bf16.mxu1 %v3003_v49 }
  0xc1   : > { %866 = vmatprep.mubr.bf16.mxu0 %v3281_v3  ;;  %907 = vmatprep.mubr.bf16.mxu1 %v3281_v3 }
  0xc3   : > { %841 = vmatpush1.bf16.msra.mxu0 %v3007_v50  ;;  %882 = vmatpush1.bf16.msra.mxu1 %v3009_v51 }
  0xc4   : > { %842 = vmatprep.subr.bf16.mxu0 %v3013_v52  ;;  %883 = vmatprep.subr.bf16.mxu1 %v3015_v53 }
  0xc7   : > { %843 = vmatpush1.bf16.msra.mxu0 %v3021_v54  ;;  %884 = vmatpush1.bf16.msra.mxu1 %v3023_v55 }
  0xc8   : > { %844 = vmatprep.subr.bf16.mxu0 %v3027_v56  ;;  %885 = vmatprep.subr.bf16.mxu1 %v3029_v57 }
  0xcb   : > { %845 = vmatpush1.bf16.msra.mxu0 %v3033_v58  ;;  %886 = vmatpush1.bf16.msra.mxu1 %v3035_v59 }
  0xcc   : > { %846 = vmatprep.subr.bf16.mxu0 %v3039_v60  ;;  %887 = vmatprep.subr.bf16.mxu1 %v3041_v61 }
  0xcf   : > { %847 = vmatpush1.bf16.msra.mxu0 %v3045_v62  ;;  %888 = vmatpush1.bf16.msra.mxu1 %v3047_v63 }
  0xd0   : > { %848 = vmatprep.subr.bf16.mxu0 %v3051_v0  ;;  %889 = vmatprep.subr.bf16.mxu1 %v3053_v1 }
  0xd3   : > { %849 = vmatpush1.bf16.msra.mxu0 %v3057_v2  ;;  %890 = vmatpush1.bf16.msra.mxu1 %v3059_v4 }
  0xd4   : > { %1148 = vmatprep.subr.bf16.mxu0 %v2963_v34  ;;  %1189 = vmatprep.subr.bf16.mxu1 %v2965_v35 }
  0xd6   : > { %867 = vmatmul.mubr.bf16.vlgmr.msra.gmra.mrb[8].mxu0 %v641_v6  ;;  %908 = vmatmul.mubr.bf16.vlgmr.msra.gmra.mrb[8].mxu1 %v641_v6 }
  0xd7   : > { %1149 = vmatpush1.bf16.msra.mxu0 %v2968_v37  ;;  %1190 = vmatpush1.bf16.msra.mxu1 %v2970_v38 }
  0xd8   : > { %1150 = vmatprep.subr.bf16.mxu0 %v2972_v39  ;;  %1191 = vmatprep.subr.bf16.mxu1 %v2976_v40 }
  0xd9   : > { %1180 = vmatprep.mubr.bf16.mxu0 %v3281_v3  ;;  %1221 = vmatprep.mubr.bf16.mxu1 %v3281_v3 }
  0xdb   : > { %1151 = vmatpush1.bf16.msra.mxu0 %v2978_v41  ;;  %1192 = vmatpush1.bf16.msra.mxu1 %v2982_v42 }
  0xdc   : > { %1152 = vmatprep.subr.bf16.mxu0 %v2984_v43  ;;  %1193 = vmatprep.subr.bf16.mxu1 %v2988_v44 }
  0xdf   : > { %1153 = vmatpush1.bf16.msra.mxu0 %v2995_v46  ;;  %1194 = vmatpush1.bf16.msra.mxu1 %v2997_v47 }
  0xe0   : > { %1154 = vmatprep.subr.bf16.mxu0 %v3001_v48  ;;  %1195 = vmatprep.subr.bf16.mxu1 %v3003_v49 }
  0xe3   : > { %1155 = vmatpush1.bf16.msra.mxu0 %v3007_v50  ;;  %1196 = vmatpush1.bf16.msra.mxu1 %v3009_v51 }
  0xe4   : > { %1156 = vmatprep.subr.bf16.mxu0 %v3013_v52  ;;  %1197 = vmatprep.subr.bf16.mxu1 %v3015_v53 }
  0xe7   : > { %1157 = vmatpush1.bf16.msra.mxu0 %v3021_v54  ;;  %1198 = vmatpush1.bf16.msra.mxu1 %v3023_v55 }
  0xe8   : > { %1158 = vmatprep.subr.bf16.mxu0 %v3027_v56  ;;  %1199 = vmatprep.subr.bf16.mxu1 %v3029_v57 }
  0xeb   : > { %1159 = vmatpush1.bf16.msra.mxu0 %v3033_v58  ;;  %1200 = vmatpush1.bf16.msra.mxu1 %v3035_v59 }
  0xec   : > { %1160 = vmatprep.subr.bf16.mxu0 %v3039_v60  ;;  %1201 = vmatprep.subr.bf16.mxu1 %v3041_v61 }
  0xef   : > { %1161 = vmatpush1.bf16.msra.mxu0 %v3045_v62  ;;  %1202 = vmatpush1.bf16.msra.mxu1 %v3047_v63 }
  0xf0   : > { %1162 = vmatprep.subr.bf16.mxu0 %v3051_v0  ;;  %1203 = vmatprep.subr.bf16.mxu1 %v3053_v1 }
  0xf3   : > { %1163 = vmatpush1.bf16.msra.mxu0 %v3057_v2  ;;  %1204 = vmatpush1.bf16.msra.mxu1 %v3059_v4 }
  0xf4   : > { %1463 = vmatprep.subr.bf16.mxu0 %v2963_v34  ;;  %1504 = vmatprep.subr.bf16.mxu1 %v2965_v35 }
 0x189   : > { %v548_v16 = vpop.f32.mrb[0].mxu0  ;;  %v601_v17 = vpop.f32.mrb[0].mxu1 }
 0x18a   : > { %v550_v19 = vpop.f32.mrb[1].mxu0  ;;  %v603_v20 = vpop.f32.mrb[1].mxu1 }
 0x18b   : > { %v552_v22 = vpop.f32.mrb[2].mxu0  ;;  %v605_v23 = vpop.f32.mrb[2].mxu1 }
 0x18c   : > { %v3101_v24 = vadd.f32 %v552_v22, %v325_v14  ;;  %v554_v25 = vpop.f32.mrb[3].mxu0  ;;  %v3103_v26 = vadd.f32 %v605_v23, %v333_v15  ;;  %v607_v27 = vpop.f32.mrb[3].mxu1  ;;  %v549_v23 = vadd.f32 %v548_v16, %v325_v14 }
 0x18d   : > { %v3105_v28 = vadd.f32 %v554_v25, %v329_v21  ;;  %v3107_v29 = vadd.f32 %v607_v27, %v337_v18  ;;  %v602_v25 = vadd.f32 %v601_v17, %v333_v15  ;;  %v551_v27 = vadd.f32 %v550_v19, %v329_v21 }
 0x191   : > { %v558_v30 = vpop.f32.mrb[4].mxu0  ;;  %v611_v31 = vpop.f32.mrb[4].mxu1 }
 0x192   : > { %v3109_v32 = vadd.f32 %v558_v30, %v325_v14  ;;  %v560_v33 = vpop.f32.mrb[5].mxu0  ;;  %v3111_v36 = vadd.f32 %v611_v31, %v333_v15  ;;  %v613_v45 = vpop.f32.mrb[5].mxu1  ;;  %v604_v30 = vadd.f32 %v603_v20, %v337_v18 }
 0x193   : > { %v3113_v5 = vadd.f32 %v560_v33, %v329_v21  ;;  %v562_v6 = vpop.f32.mrb[6].mxu0  ;;  %v3115_v7 = vadd.f32 %v613_v45, %v337_v18  ;;  %v615_v8 = vpop.f32.mrb[6].mxu1 }
 0x194   : > { %3297 = vst [vmem:[#allocation19_spill] sm:$0xff] %v3109_v32  ;;  %3298 = vst [vmem:[#allocation20_spill] sm:$0xff] %v3111_v36  ;;  %v3117_v9 = vadd.f32 %v562_v6, %v325_v14  ;;  %v564_v10 = vpop.f32.mrb[7].mxu0  ;;  %v3119_v11 = vadd.f32 %v615_v8, %v333_v15  ;;  %v617_v12 = vpop.f32.mrb[7].mxu1 }
 0x195   : > { %3299 = vst [vmem:[#allocation21_spill] sm:$0xff] %v3113_v5  ;;  %3300 = vst [vmem:[#allocation22_spill] sm:$0xff] %v3115_v7  ;;  %v3121_v13 = vadd.f32 %v564_v10, %v329_v21  ;;  %v3123_v22 = vadd.f32 %v617_v12, %v337_v18 }
 0x196   : > { %3301 = vst [vmem:[#allocation23_spill] sm:$0xff] %v3117_v9  ;;  %3302 = vst [vmem:[#allocation24_spill] sm:$0xff] %v3119_v11 }
 0x197   : > { %3303 = vst [vmem:[#allocation25_spill] sm:$0xff] %v3121_v13 }
 0x1a9   : > { %v868_v31 = vpop.f32.mrb[8].mxu0  ;;  %v909_v33 = vpop.f32.mrb[8].mxu1 }
 0x1aa   : > { %v916_v3 = vadd.f32 %v868_v31, %v549_v23  ;;  %v918_v45 = vadd.f32 %v909_v33, %v602_v25  ;;  %v870_v7 = vpop.f32.mrb[9].mxu0  ;;  %v911_v5 = vpop.f32.mrb[9].mxu1  ;;  %v3304_v25 = vmov 0  }
 0x1ab   : > { %v917_v6 = vadd.f32 %v870_v7, %v551_v27  ;;  %v919_v9 = vadd.f32 %v911_v5, %v604_v30  ;;  %v872_v36 = vpop.f32.mrb[10].mxu0  ;;  %v913_v8 = vpop.f32.mrb[10].mxu1 }
 0x1ac   : > { %v2106_v11 = vmul.f32 -1.442695, %v916_v3  ;;  %v873_v32 = vpop.f32.mrb[11].mxu0  ;;  %v914_v10 = vpop.f32.mrb[11].mxu1  ;;  %v2108_v14 = vmul.f32 -1.442695, %v918_v45 }
 0x1ad   : > { %v2107_v13 = vmul.f32 -1.442695, %v917_v6  ;;  %v939_v36 = vld [vmem:[#allocation3] sm:$0xff] }
 0x1ae   : > { %2423 = vpow2.f32 %v2106_v11 }
 0x1af   : > { %2425 = vpow2.f32 %v2107_v13 }
 0x1b0   : > { %2427 = vtanh.f32 %v919_v9 }
 0x1b1   : > { %2429 = vpow2.f32 %v2108_v14 }
 0x1b8   : > { %v2424_v15 = vpop.eup %2423 }
 0x1b9   : > { %v929_v16 = vadd.f32 1.0, %v2424_v15  ;;  %v2426_v17 = vpop.eup %2425 }
 0x1ba   : > { %v930_v18 = vadd.f32 1.0, %v2426_v17  ;;  %v2428_v19 = vpop.eup %2427 }
 0x1bb   : > { %2431 = vrcp.f32 %v929_v16  ;;  %v2430_v20 = vpop.eup %2429 }
 0x1bc   : > { %2433 = vrcp.f32 %v930_v18  ;;  %v931_v5 = vadd.f32 1.0, %v2430_v20 }
 0x1be   : > { %2435 = vrcp.f32 %v931_v5 }
 0x1c5   : > { %v2432_v21 = vpop.eup %2431 }
 0x1c6   : > { %v941_v3 = vmul.f32 %v2432_v21, %v2428_v19  ;;  %v2434_v32 = vpop.eup %2433 }
 0x1c7   : > { %v940_v7 = vmul.f32 %v2434_v32, %v939_v36 }
 0x1c8   : > { %v2436_v9 = vpop.eup %2435 }
 0x1c9   : > { %v3125_v11 = vadd.f32 %v941_v3, %v940_v7 }
 0x1cb   : > { %2437 = vtanh.f32 %v3125_v11 }
 0x1d5   : > { %v2438_v12 = vpop.eup %2437 }
 0x1d6   : > { %v944_v13 = vmul.f32 %v2438_v12, %v2436_v9 }
 0x1d8   : > { %v955_v23 = vpack.c.bf16 %v944_v13, %v944_v13 }
 0x1da   : > { %1181 = vmatmul.mubr.bf16.vlgmr.msra.gmra.mrb[12].mxu0 %v955_v23  ;;  %1222 = vmatmul.mubr.bf16.vlgmr.msra.gmra.mrb[12].mxu1 %v955_v23  ;;  %948 = vst [vmem:[%s2958_s27] sm:$0xf] %v955_v23 }
 0x1db   : > { %1464 = vmatpush1.bf16.msra.mxu0 %v2968_v37  ;;  %1505 = vmatpush1.bf16.msra.mxu1 %v2970_v38 }
 0x1dc   : > { %1465 = vmatprep.subr.bf16.mxu0 %v2972_v39  ;;  %1506 = vmatprep.subr.bf16.mxu1 %v2976_v40 }
 0x1dd   : > { %1495 = vmatprep.mubr.bf16.mxu0 %v3304_v25  ;;  %1536 = vmatprep.mubr.bf16.mxu1 %v3304_v25 }
 0x1df   : > { %1466 = vmatpush1.bf16.msra.mxu0 %v2978_v41  ;;  %1507 = vmatpush1.bf16.msra.mxu1 %v2982_v42 }
 0x1e0   : > { %1467 = vmatprep.subr.bf16.mxu0 %v2984_v43  ;;  %1508 = vmatprep.subr.bf16.mxu1 %v2988_v44 }
 0x1e3   : > { %1468 = vmatpush1.bf16.msra.mxu0 %v2995_v46  ;;  %1509 = vmatpush1.bf16.msra.mxu1 %v2997_v47 }
 0x1e4   : > { %1469 = vmatprep.subr.bf16.mxu0 %v3001_v48  ;;  %1510 = vmatprep.subr.bf16.mxu1 %v3003_v49 }
 0x1e7   : > { %1470 = vmatpush1.bf16.msra.mxu0 %v3007_v50  ;;  %1511 = vmatpush1.bf16.msra.mxu1 %v3009_v51 }
 0x1e8   : > { %1471 = vmatprep.subr.bf16.mxu0 %v3013_v52  ;;  %1512 = vmatprep.subr.bf16.mxu1 %v3015_v53 }
 0x1eb   : > { %1472 = vmatpush1.bf16.msra.mxu0 %v3021_v54  ;;  %1513 = vmatpush1.bf16.msra.mxu1 %v3023_v55 }
 0x1ec   : > { %1473 = vmatprep.subr.bf16.mxu0 %v3027_v56  ;;  %1514 = vmatprep.subr.bf16.mxu1 %v3029_v57 }
 0x1ef   : > { %1474 = vmatpush1.bf16.msra.mxu0 %v3033_v58  ;;  %1515 = vmatpush1.bf16.msra.mxu1 %v3035_v59 }
 0x1f0   : > { %1475 = vmatprep.subr.bf16.mxu0 %v3039_v60  ;;  %1516 = vmatprep.subr.bf16.mxu1 %v3041_v61 }
 0x1f3   : > { %1476 = vmatpush1.bf16.msra.mxu0 %v3045_v62  ;;  %1517 = vmatpush1.bf16.msra.mxu1 %v3047_v63 }
 0x1f4   : > { %1477 = vmatprep.subr.bf16.mxu0 %v3051_v0  ;;  %1518 = vmatprep.subr.bf16.mxu1 %v3053_v1 }
 0x1f7   : > { %1478 = vmatpush1.bf16.msra.mxu0 %v3057_v2  ;;  %1519 = vmatpush1.bf16.msra.mxu1 %v3059_v4 }
 0x1f8   : > { %1778 = vmatprep.subr.bf16.mxu0 %v2963_v34  ;;  %1819 = vmatprep.subr.bf16.mxu1 %v2965_v35 }
 0x2ad   : > { %v1182_v27 = vpop.f32.mrb[12].mxu0  ;;  %v1223_v30 = vpop.f32.mrb[12].mxu1 }
 0x2ae   : > { %v1230_v31 = vadd.f32 %v1182_v27, %v3101_v24  ;;  %v1232_v33 = vadd.f32 %v1223_v30, %v3103_v26  ;;  %v1184_v45 = vpop.f32.mrb[13].mxu0  ;;  %v1225_v6 = vpop.f32.mrb[13].mxu1 }
 0x2af   : > { %v1231_v8 = vadd.f32 %v1184_v45, %v3105_v28  ;;  %v1233_v10 = vadd.f32 %v1225_v6, %v3107_v29  ;;  %v1186_v14 = vpop.f32.mrb[14].mxu0  ;;  %v1227_v15 = vpop.f32.mrb[14].mxu1  ;;  %v3309_v6 = vld [vmem:[#allocation23_spill] sm:$0xff] }
 0x2b0   : > { %v2141_v16 = vmul.f32 -1.442695, %v1230_v31  ;;  %v1187_v17 = vpop.f32.mrb[15].mxu0  ;;  %v1228_v18 = vpop.f32.mrb[15].mxu1  ;;  %v2143_v35 = vmul.f32 -1.442695, %v1232_v33 }
 0x2b1   : > { %v2142_v34 = vmul.f32 -1.442695, %v1231_v8  ;;  %v3311_v17 = vld [vmem:[#allocation25_spill] sm:$0xff] }
 0x2b2   : > { %2439 = vpow2.f32 %v2141_v16 }
 0x2b3   : > { %2441 = vpow2.f32 %v2142_v34 }
 0x2b4   : > { %2443 = vtanh.f32 %v1233_v10  ;;  %v3310_v10 = vld [vmem:[#allocation24_spill] sm:$0xff] }
 0x2b5   : > { %2445 = vpow2.f32 %v2143_v35 }
 0x2bc   : > { %v2440_v19 = vpop.eup %2439 }
 0x2bd   : > { %v1243_v20 = vadd.f32 1.0, %v2440_v19  ;;  %v2442_v24 = vpop.eup %2441 }
 0x2be   : > { %v1244_v26 = vadd.f32 1.0, %v2442_v24  ;;  %v2444_v28 = vpop.eup %2443 }
 0x2bf   : > { %2447 = vrcp.f32 %v1243_v20  ;;  %v2446_v29 = vpop.eup %2445 }
 0x2c0   : > { %2449 = vrcp.f32 %v1244_v26  ;;  %v1245_v32 = vadd.f32 1.0, %v2446_v29 }
 0x2c2   : > { %2451 = vrcp.f32 %v1245_v32 }
 0x2c9   : > { %v2448_v21 = vpop.eup %2447 }
 0x2ca   : > { %v1255_v36 = vmul.f32 %v2448_v21, %v2444_v28  ;;  %v2450_v3 = vpop.eup %2449 }
 0x2cb   : > { %v1254_v5 = vmul.f32 %v2450_v3, %v3125_v11 }
 0x2cc   : > { %v2452_v9 = vpop.eup %2451 }
 0x2cd   : > { %v3168_v7 = vadd.f32 %v1255_v36, %v1254_v5 }
 0x2cf   : > { %2453 = vtanh.f32 %v3168_v7 }
 0x2d9   : > { %v2454_v12 = vpop.eup %2453 }
 0x2da   : > { %v1258_v13 = vmul.f32 %v2454_v12, %v2452_v9 }
 0x2dc   : > { %v1270_v23 = vpack.c.bf16 %v1258_v13, %v1258_v13 }
 0x2de   : > { %1496 = vmatmul.mubr.bf16.vlgmr.msra.gmra.mrb[16].mxu0 %v1270_v23  ;;  %1537 = vmatmul.mubr.bf16.vlgmr.msra.gmra.mrb[16].mxu1 %v1270_v23  ;;  %2144 = vst [vmem:[%s2958_s27 + $0x4] sm:$0xf] %v1270_v23 }
 0x2df   : > { %1779 = vmatpush1.bf16.msra.mxu0 %v2968_v37  ;;  %1820 = vmatpush1.bf16.msra.mxu1 %v2970_v38 }
 0x2e0   : > { %1780 = vmatprep.subr.bf16.mxu0 %v2972_v39  ;;  %1821 = vmatprep.subr.bf16.mxu1 %v2976_v40  ;;  %v3305_v39 = vld [vmem:[#allocation19_spill] sm:$0xff] }
 0x2e1   : > { %1810 = vmatprep.mubr.bf16.mxu0 %v3304_v25  ;;  %1851 = vmatprep.mubr.bf16.mxu1 %v3304_v25 }
 0x2e3   : > { %1781 = vmatpush1.bf16.msra.mxu0 %v2978_v41  ;;  %1822 = vmatpush1.bf16.msra.mxu1 %v2982_v42  ;;  %v3306_v41 = vld [vmem:[#allocation20_spill] sm:$0xff] }
 0x2e4   : > { %1782 = vmatprep.subr.bf16.mxu0 %v2984_v43  ;;  %1823 = vmatprep.subr.bf16.mxu1 %v2988_v44 }
 0x2e7   : > { %1783 = vmatpush1.bf16.msra.mxu0 %v2995_v46  ;;  %1824 = vmatpush1.bf16.msra.mxu1 %v2997_v47  ;;  %v3307_v46 = vld [vmem:[#allocation21_spill] sm:$0xff] }
 0x2e8   : > { %1784 = vmatprep.subr.bf16.mxu0 %v3001_v48  ;;  %1825 = vmatprep.subr.bf16.mxu1 %v3003_v49  ;;  %v3308_v48 = vld [vmem:[#allocation22_spill] sm:$0xff] }
 0x2eb   : > { %1785 = vmatpush1.bf16.msra.mxu0 %v3007_v50  ;;  %1826 = vmatpush1.bf16.msra.mxu1 %v3009_v51 }
 0x2ec   : > { %1786 = vmatprep.subr.bf16.mxu0 %v3013_v52  ;;  %1827 = vmatprep.subr.bf16.mxu1 %v3015_v53 }
 0x2ef   : > { %1787 = vmatpush1.bf16.msra.mxu0 %v3021_v54  ;;  %1828 = vmatpush1.bf16.msra.mxu1 %v3023_v55 }
 0x2f0   : > { %1788 = vmatprep.subr.bf16.mxu0 %v3027_v56  ;;  %1829 = vmatprep.subr.bf16.mxu1 %v3029_v57 }
 0x2f3   : > { %1789 = vmatpush1.bf16.msra.mxu0 %v3033_v58  ;;  %1830 = vmatpush1.bf16.msra.mxu1 %v3035_v59 }
 0x2f4   : > { %1790 = vmatprep.subr.bf16.mxu0 %v3039_v60  ;;  %1831 = vmatprep.subr.bf16.mxu1 %v3041_v61 }
 0x2f7   : > { %1791 = vmatpush1.bf16.msra.mxu0 %v3045_v62  ;;  %1832 = vmatpush1.bf16.msra.mxu1 %v3047_v63 }
 0x2f8   : > { %1792 = vmatprep.subr.bf16.mxu0 %v3051_v0  ;;  %1833 = vmatprep.subr.bf16.mxu1 %v3053_v1 }
 0x2fb   : > { %1793 = vmatpush1.bf16.msra.mxu0 %v3057_v2  ;;  %1834 = vmatpush1.bf16.msra.mxu1 %v3059_v4 }
 0x3b1   : > { %v1497_v37 = vpop.f32.mrb[16].mxu0  ;;  %v1538_v38 = vpop.f32.mrb[16].mxu1 }
 0x3b2   : > { %v1545_v40 = vadd.f32 %v1497_v37, %v3305_v39  ;;  %v1547_v42 = vadd.f32 %v1538_v38, %v3306_v41  ;;  %v1499_v43 = vpop.f32.mrb[17].mxu0  ;;  %v1540_v44 = vpop.f32.mrb[17].mxu1 }
 0x3b3   : > { %v1546_v47 = vadd.f32 %v1499_v43, %v3307_v46  ;;  %v1548_v49 = vadd.f32 %v1540_v44, %v3308_v48  ;;  %v1501_v50 = vpop.f32.mrb[18].mxu0  ;;  %v1542_v51 = vpop.f32.mrb[18].mxu1 }
 0x3b4   : > { %v2177_v52 = vmul.f32 -1.442695, %v1545_v40  ;;  %v1502_v53 = vpop.f32.mrb[19].mxu0  ;;  %v1543_v54 = vpop.f32.mrb[19].mxu1  ;;  %v2179_v56 = vmul.f32 -1.442695, %v1547_v42 }
 0x3b5   : > { %v2178_v55 = vmul.f32 -1.442695, %v1546_v47 }
 0x3b6   : > { %2455 = vpow2.f32 %v2177_v52 }
 0x3b7   : > { %2457 = vpow2.f32 %v2178_v55 }
 0x3b8   : > { %2459 = vtanh.f32 %v1548_v49 }
 0x3b9   : > { %2461 = vpow2.f32 %v2179_v56 }
 0x3c0   : > { %v2456_v57 = vpop.eup %2455 }
 0x3c1   : > { %v1558_v58 = vadd.f32 1.0, %v2456_v57  ;;  %v2458_v59 = vpop.eup %2457 }
 0x3c2   : > { %v1559_v60 = vadd.f32 1.0, %v2458_v59  ;;  %v2460_v61 = vpop.eup %2459 }
 0x3c3   : > { %2463 = vrcp.f32 %v1558_v58  ;;  %v2462_v62 = vpop.eup %2461 }
 0x3c4   : > { %2465 = vrcp.f32 %v1559_v60  ;;  %v1560_v2 = vadd.f32 1.0, %v2462_v62 }
 0x3c6   : > { %2467 = vrcp.f32 %v1560_v2 }
 0x3cd   : > { %v2464_v63 = vpop.eup %2463 }
 0x3ce   : > { %v1570_v0 = vmul.f32 %v2464_v63, %v2460_v61  ;;  %v2466_v1 = vpop.eup %2465 }
 0x3cf   : > { %v1569_v4 = vmul.f32 %v2466_v1, %v3168_v7 }
 0x3d0   : > { %v2468_v25 = vpop.eup %2467 }
 0x3d1   : > { %v1571_v11 = vadd.f32 %v1570_v0, %v1569_v4 }
 0x3d3   : > { %2469 = vtanh.f32 %v1571_v11 }
 0x3dd   : > { %v2470_v27 = vpop.eup %2469 }
 0x3de   : > { %v1573_v30 = vmul.f32 %v2470_v27, %v2468_v25 }
 0x3e0   : > { %v1585_v31 = vpack.c.bf16 %v1573_v30, %v1573_v30 }
 0x3e2   : > { %1811 = vmatmul.mubr.bf16.vlgmr.msra.gmra.mrb[20].mxu0 %v1585_v31  ;;  %1852 = vmatmul.mubr.bf16.vlgmr.msra.gmra.mrb[20].mxu1 %v1585_v31  ;;  %2180 = vst [vmem:[%s2958_s27 + $0x8] sm:$0xf] %v1585_v31 }
 0x4b5   : > { %v1812_v33 = vpop.f32.mrb[20].mxu0  ;;  %v1853_v45 = vpop.f32.mrb[20].mxu1 }
 0x4b6   : > { %v1860_v8 = vadd.f32 %v1812_v33, %v3309_v6  ;;  %v1862_v14 = vadd.f32 %v1853_v45, %v3310_v10  ;;  %v1814_v15 = vpop.f32.mrb[21].mxu0  ;;  %v1855_v16 = vpop.f32.mrb[21].mxu1 }
 0x4b7   : > { %v1861_v18 = vadd.f32 %v1814_v15, %v3311_v17  ;;  %v1863_v34 = vadd.f32 %v1855_v16, %v3123_v22  ;;  %v1816_v35 = vpop.f32.mrb[22].mxu0  ;;  %v1857_v19 = vpop.f32.mrb[22].mxu1 }
 0x4b8   : > { %v2213_v20 = vmul.f32 -1.442695, %v1860_v8  ;;  %v1817_v24 = vpop.f32.mrb[23].mxu0  ;;  %v1858_v26 = vpop.f32.mrb[23].mxu1  ;;  %v2215_v29 = vmul.f32 -1.442695, %v1862_v14 }
 0x4b9   : > { %v2214_v28 = vmul.f32 -1.442695, %v1861_v18 }
 0x4ba   : > { %2471 = vpow2.f32 %v2213_v20 }
 0x4bb   : > { %2473 = vpow2.f32 %v2214_v28 }
 0x4bc   : > { %2475 = vtanh.f32 %v1863_v34 }
 0x4bd   : > { %2477 = vpow2.f32 %v2215_v29 }
 0x4c4   : > { %v2472_v21 = vpop.eup %2471 }
 0x4c5   : > { %v1873_v36 = vadd.f32 1.0, %v2472_v21  ;;  %v2474_v3 = vpop.eup %2473 }
 0x4c6   : > { %v1874_v32 = vadd.f32 1.0, %v2474_v3  ;;  %v2476_v22 = vpop.eup %2475 }
 0x4c7   : > { %2479 = vrcp.f32 %v1873_v36  ;;  %v2478_v5 = vpop.eup %2477 }
 0x4c8   : > { %2481 = vrcp.f32 %v1874_v32  ;;  %v1875_v13 = vadd.f32 1.0, %v2478_v5 }
 0x4ca   : > { %2483 = vrcp.f32 %v1875_v13 }
 0x4d1   : > { %v2480_v7 = vpop.eup %2479 }
 0x4d2   : > { %v1885_v9 = vmul.f32 %v2480_v7, %v2476_v22  ;;  %v2482_v12 = vpop.eup %2481 }
 0x4d3   : > { %v1884_v23 = vmul.f32 %v2482_v12, %v1571_v11 }
 0x4d4   : > { %v2484_v38 = vpop.eup %2483 }
 0x4d5   : > { %v1886_v37 = vadd.f32 %v1885_v9, %v1884_v23 }
 0x4d7   : > { %2485 = vtanh.f32 %v1886_v37  ;;  %1889 = vst [vmem:[#allocation3] sm:$0xff] %v1886_v37 }
 0x4e1   : > { %v2486_v39 = vpop.eup %2485 }
 0x4e2   : > { %v1888_v40 = vmul.f32 %v2486_v39, %v2484_v38 }
 0x4e4   : > { %1890 = vst [vmem:[#allocation2] sm:$0xff] %v1888_v40  ;;  %v1891_v41 = vpack.c.bf16 %v1888_v40, %v1888_v40 }
 0x4e6   : > { %2216 = vst [vmem:[%s2958_s27 + $0xc] sm:$0xf] %v1891_v41 }
 0x4e7   : > { %2614 = shalt.err (!%p2611_p4)
}
 0x4e8   : > { %s2615_s21 = scalar_lea.hbm %s3219_s28, 256  ;;  %s2619_s9 = scalar_lea.hbm %s3275_s4, 512 }
 0x4e9   : > { %p2616_p2 = scmp.ne.s32.totalorder %s3219_s28, %s2615_s21  ;;  %p2620_p1 = scmp.lt.u32.totalorder %s3219_s28, %s3275_s4 }
 0x4ea   : > { %p2621_p11 = scmp.lt.u32.totalorder %s2619_s9, %s2615_s21  ;;  %p2623_p6 = scmp.lt.u32.totalorder %s2615_s21, %s3219_s28 }
 0x4eb   : > { %p2617_p8 = pnand %p2616_p2, %p2882_p10 }
 0x4ec   : > { %p2622_p13 = por %p2621_p11, %p2620_p1 }
 0x4ed   : > { %p2618_p12 = pneg %p2617_p8 }
 0x4ee   : > { %p2624_p3 = por %p2623_p6, %p2622_p13 }
 0x4f0   : > { %p2625_p5 = pnand %p2624_p3, %p2618_p12 }
 0x4f2   : > { %2628 = shalt.err (!%p2625_p5)
}
 0x4f3   : > { %s2704_s27 = smov 64   ;;  %s2705_s23 = smov 4  }
 0x4f4   : > { %2238 = dma.vmem_to_hbm [thread:$0]  (%p2882_p10), %s3221_s25, 256, %s3219_s28, %s1895_s29, %s2704_s27, %s2704_s27, %s2705_s23  }
 0x4f5 PF: > { %s3312_s24 = sld [smem:[#allocation18_spill]]  ;;  %s1924_s22 = sand.u32 1, %s2671_s15  }
 0x4f6   : > { %p3314_p9 = scmp.ge.s32.totalorder %s2691_s20, 2  ;;  %s1925_s26 = scalar_lea.sflag [#allocation7], %s1924_s22 }
 0x4fb   : > { %p3313_p7 = scmp.ne.s32.totalorder %s3312_s24, 0 }
 0x4fd   : > { %p2255_p0 = pnand %p3314_p9, %p3313_p7 }
 0x4ff   : > { %2666 = dma.done.wait (!%p2255_p0), %s1925_s26, 256  }
 0x500   : > { %2668 = vsyncadd (!%p2255_p0), %s1925_s26, 4294967040  ;;  %s22_s20 = sadd.s32 1, %s2691_s20   ;;  %s3315_s15 = smov %s2675_s16 }
 0x501   : > { %p19_p4 = scmp.ge.s32.totalorder %s22_s20, 4   ;;  %s3316_s16 = smov %s2679_s17 }
 0x502   : > { %s3317_s17 = smov %s2894_s11  ;;  %s3318_s18 = smov %s2687_s19 }
 0x503   : > { %s3319_s19 = smov %s3321_s7  ;;  %21 = sbr.rel (!%p19_p4) target bundleno = 8 (0x8), region = 103 }
 0x50a   :  { %1930 = vsyncpa [#allocation6], 1 }
 0x50b   :  { %1932 = vsyncpa [#allocation6 + $0x1], 1 }
 0x50c   :  { %1933 = vsyncpa [#allocation9], 1 }
 0x50d   :  { %1934 = vsyncpa [#allocation12], 1 }
 0x50e   :  { %1935 = vsyncpa [#allocation7], 1 }
 0x50f   :  { %1937 = vsyncpa [#allocation7 + $0x1], 1 }

</bundles_post_ra>
